<compile_context>
chip_gen: v6e
topology: v6e:2x2x1
jax: 0.10.0
libtpu: 0.0.40
codegen_flags: <defaults>
</compile_context>

<pallas_src>
import jax
import jax.numpy as jnp
from jax.experimental import pallas as pl
from jax.experimental.pallas import tpu as pltpu


def node_update_kernel(h_ref, self_h_ref, wa_ref, wb_ref, b_ref, out_ref):
    # relu(h @ W_a + self_h @ W_b + b): two MXU accumulates + VPU epilogue.
    # Operand dtype for the MXU is taken from the (pre-cast) weight slabs, so
    # an optional f32 -> bf16 cast of the input tiles happens here (in VMEM),
    # never as an extra HBM pass in the wrapper.
    cd = wa_ref.dtype
    acc = jnp.dot(h_ref[...].astype(cd), wa_ref[...],
                  preferred_element_type=jnp.float32)
    acc = acc + jnp.dot(self_h_ref[...].astype(cd), wb_ref[...],
                        preferred_element_type=jnp.float32)
    acc = acc + b_ref[...]                  # (1, tn) broadcasts over rows
    out_ref[...] = jnp.maximum(acc, 0.0).astype(out_ref.dtype)


def node_update(h, self_h, w, b, *, tm=2048, tn=None,
                compute_dtype=None, out_dtype=jnp.float32):
    """GAT NodeUpdate forward.

    h, self_h : (N, D) float32 node features.
    w         : (out_dim, 2D) float32  -- nn.Linear weight (in_dim = 2D).
    b         : (out_dim,) or (1, out_dim) float32 -- nn.Linear bias.
    tm        : node tile (rows per grid step); ragged N handled by Pallas.
    tn        : out_dim tile (defaults to full out_dim, keeping weights resident).
    compute_dtype : optional (e.g. jnp.bfloat16) MXU operand dtype; inputs are
                    cast in-kernel, accumulation stays f32.
    out_dtype : output dtype (f32 matches the PyTorch module; bf16 halves
                writeback bytes).
    Returns (N, out_dim) == relu(cat(self_h, h - self_h) @ w.T + b).
    """
    N, D = h.shape
    out_dim, in_dim = w.shape
    assert in_dim == 2 * D, "nn.Linear in_dim must equal 2 * feature dim"

    # Algebraic split of the concat-matmul (once, outside the kernel; tiny).
    w_a = w[:, D:].T                    # (D, out_dim)
    w_b = (w[:, :D] - w[:, D:]).T       # (D, out_dim)
    b2 = jnp.asarray(b, jnp.float32).reshape(1, out_dim)

    if compute_dtype is not None:
        # Only the small weight slabs are cast in the wrapper; the big inputs
        # are cast inside the kernel to avoid an extra HBM pass.
        w_a = w_a.astype(compute_dtype)
        w_b = w_b.astype(compute_dtype)

    if tn is None:
        tn = out_dim                    # weights/bias resident, DMA'd once
    assert out_dim % tn == 0
    assert tn == out_dim or tn % 128 == 0

    # Don't let the node tile exceed (rounded-up) N -- wasted VMEM otherwise.
    tm = min(tm, max(8, ((N + 7) // 8) * 8))
    assert tm % 8 == 0

    grid = (pl.cdiv(N, tm), out_dim // tn)

    # VMEM at tm=2048, D=64 (lane-padded to 128), tn=128, f32, double-buffered:
    # inputs ~4 MiB + output ~2 MiB + weights/bias ~0.13 MiB  ==> well under the
    # explicit 48 MiB budget (which itself fits v5e/v6e/v7x physical VMEM).
    out = pl.pallas_call(
        node_update_kernel,
        out_shape=jax.ShapeDtypeStruct((N, out_dim), out_dtype),
        grid_spec=pltpu.PrefetchScalarGridSpec(
            num_scalar_prefetch=0,
            grid=grid,
            in_specs=[
                pl.BlockSpec((tm, D), lambda i, j: (i, 0)),   # h tile
                pl.BlockSpec((tm, D), lambda i, j: (i, 0)),   # self_h tile
                pl.BlockSpec((D, tn), lambda i, j: (0, j)),   # W_a slab
                pl.BlockSpec((D, tn), lambda i, j: (0, j)),   # W_b slab
                pl.BlockSpec((1, tn), lambda i, j: (0, j)),   # bias
            ],
            out_specs=pl.BlockSpec((tm, tn), lambda i, j: (i, j)),
        ),
        compiler_params=pltpu.CompilerParams(
            dimension_semantics=("parallel", "parallel"),
            vmem_limit_bytes=48 * 1024 * 1024),
    )(h, self_h, w_a, w_b, b2)

    return out


def node_update_ref(h, self_h, w, b):
    diff = h - self_h
    x = jnp.concatenate([self_h, diff], axis=1)
    return jnp.maximum(x @ w.T + b.reshape(1, -1), 0.0)


if __name__ == "__main__":
    # Small shapes consistent with the module: N nodes (deliberately NOT a
    # multiple of the small tile used below, to exercise ragged handling),
    # feature dim D, in_dim = 2*D, lane-dense out_dim.
    N, D = 1000, 64
    in_dim, out_dim = 2 * D, 128

    key = jax.random.PRNGKey(0)
    k_h, k_sh, k_w, k_b = jax.random.split(key, 4)

    h = jax.random.normal(k_h, (N, D), dtype=jnp.float32)
    self_h = jax.random.normal(k_sh, (N, D), dtype=jnp.float32)

    # Deterministic nn.Linear-style init: U(-1/sqrt(in_dim), 1/sqrt(in_dim)).
    bound = 1.0 / jnp.sqrt(jnp.float32(in_dim))
    w = jax.random.uniform(k_w, (out_dim, in_dim), jnp.float32, -bound, bound)
    b = jax.random.uniform(k_b, (out_dim,), jnp.float32, -bound, bound)

    ref = node_update_ref(h, self_h, w, b)

    # 1) Default config (single large node tile, clamped to N): exact f32 path.
    out = node_update(h, self_h, w, b)
    out = jax.block_until_ready(out)
    assert out.shape == (N, out_dim)
    assert jnp.allclose(out, ref, atol=1e-5, rtol=1e-5)

    # 2) Small tile to exercise the ragged multi-block node grid (1000 / 256).
    out_small = node_update(h, self_h, w, b, tm=256, tn=128)
    out_small = jax.block_until_ready(out_small)
    assert jnp.allclose(out_small, ref, atol=1e-5, rtol=1e-5)

    # 3) bf16 MXU-operand path (cast in-kernel), f32 accumulation, f32 output.
    out_bf16 = node_update(h, self_h, w, b, compute_dtype=jnp.bfloat16)
    out_bf16 = jax.block_until_ready(out_bf16)
    assert jnp.allclose(out_bf16, ref, atol=1e-1, rtol=1e-1)

    print("KERNEL_OK")
</pallas_src>

<mosaic_0001>
module attributes {stable_mosaic.version = 11 : i64} {
  func.func @node_update_kernel(%arg0: i32, %arg1: i32, %arg2: memref<1000x64xf32, #tpu.memory_space<vmem>>, %arg3: memref<1000x64xf32, #tpu.memory_space<vmem>>, %arg4: memref<64x128xf32, #tpu.memory_space<vmem>>, %arg5: memref<64x128xf32, #tpu.memory_space<vmem>>, %arg6: memref<1x128xf32, #tpu.memory_space<vmem>>, %arg7: memref<1000x128xf32, #tpu.memory_space<vmem>>) attributes {dimension_semantics = [#tpu.dimension_semantics<parallel>, #tpu.dimension_semantics<parallel>], iteration_bounds = array<i64: 1, 1>, scalar_prefetch = 0 : i64, scratch_operands = 0 : i64, tpu.core_type = #tpu.core_type<tc>, window_params = [{transform_indices = @transform_0, window_bounds = array<i64: 1000, 64>}, {transform_indices = @transform_1, window_bounds = array<i64: 1000, 64>}, {transform_indices = @transform_2, window_bounds = array<i64: 64, 128>}, {transform_indices = @transform_3, window_bounds = array<i64: 64, 128>}, {transform_indices = @transform_4, window_bounds = array<i64: 1, 128>}, {transform_indices = @transform_5, window_bounds = array<i64: 1000, 128>}]} {
    %c0 = arith.constant 0 : index
    %c0_0 = arith.constant 0 : index
    %0 = vector.load %arg2[%c0, %c0_0] : memref<1000x64xf32, #tpu.memory_space<vmem>>, vector<1000x64xf32>
    %c0_1 = arith.constant 0 : index
    %c0_2 = arith.constant 0 : index
    %1 = vector.load %arg4[%c0_1, %c0_2] : memref<64x128xf32, #tpu.memory_space<vmem>>, vector<64x128xf32>
    %cst = arith.constant dense<0.000000e+00> : vector<1000x128xf32>
    %2 = tpu.matmul %0, %1, %cst {dimension_numbers = #tpu.dot_dimension_numbers<[1], [0], [0], [1], [0, 0, 1, 1], [], []>} : vector<1000x64xf32>, vector<64x128xf32>, vector<1000x128xf32> -> vector<1000x128xf32>
    %c0_3 = arith.constant 0 : index
    %c0_4 = arith.constant 0 : index
    %3 = vector.load %arg3[%c0_3, %c0_4] : memref<1000x64xf32, #tpu.memory_space<vmem>>, vector<1000x64xf32>
    %c0_5 = arith.constant 0 : index
    %c0_6 = arith.constant 0 : index
    %4 = vector.load %arg5[%c0_5, %c0_6] : memref<64x128xf32, #tpu.memory_space<vmem>>, vector<64x128xf32>
    %cst_7 = arith.constant dense<0.000000e+00> : vector<1000x128xf32>
    %5 = tpu.matmul %3, %4, %cst_7 {dimension_numbers = #tpu.dot_dimension_numbers<[1], [0], [0], [1], [0, 0, 1, 1], [], []>} : vector<1000x64xf32>, vector<64x128xf32>, vector<1000x128xf32> -> vector<1000x128xf32>
    %6 = arith.addf %2, %5 : vector<1000x128xf32>
    %c0_8 = arith.constant 0 : index
    %c0_9 = arith.constant 0 : index
    %7 = vector.load %arg6[%c0_8, %c0_9] : memref<1x128xf32, #tpu.memory_space<vmem>>, vector<1x128xf32>
    %8 = vector.broadcast %7 : vector<1x128xf32> to vector<1000x128xf32>
    %9 = arith.addf %6, %8 : vector<1000x128xf32>
    %cst_10 = arith.constant 0.000000e+00 : f32
    %10 = vector.broadcast %cst_10 : f32 to vector<1000x128xf32>
    %11 = arith.maximumf %9, %10 : vector<1000x128xf32>
    %c0_11 = arith.constant 0 : index
    %c0_12 = arith.constant 0 : index
    %12 = vector.load %arg7[%c0_11, %c0_12] : memref<1000x128xf32, #tpu.memory_space<vmem>>, vector<1000x128xf32>
    tpu.vector_store %arg7[%c0_11, %c0_12], %11 {strides = array<i32>} : memref<1000x128xf32, #tpu.memory_space<vmem>>, vector<1000x128xf32>,
    return
  }
  func.func @transform_0(%arg0: i32, %arg1: i32) -> (i32, i32) {
    %c0_i32 = arith.constant 0 : i32
    %c0_i32_0 = arith.constant 0 : i32
    return %arg0, %c0_i32 : i32, i32
  }
  func.func @transform_1(%arg0: i32, %arg1: i32) -> (i32, i32) {
    %c0_i32 = arith.constant 0 : i32
    %c0_i32_0 = arith.constant 0 : i32
    return %arg0, %c0_i32 : i32, i32
  }
  func.func @transform_2(%arg0: i32, %arg1: i32) -> (i32, i32) {
    %c0_i32 = arith.constant 0 : i32
    %c0_i32_0 = arith.constant 0 : i32
    return %c0_i32, %arg1 : i32, i32
  }
  func.func @transform_3(%arg0: i32, %arg1: i32) -> (i32, i32) {
    %c0_i32 = arith.constant 0 : i32
    %c0_i32_0 = arith.constant 0 : i32
    return %c0_i32, %arg1 : i32, i32
  }
  func.func @transform_4(%arg0: i32, %arg1: i32) -> (i32, i32) {
    %c0_i32 = arith.constant 0 : i32
    %c0_i32_0 = arith.constant 0 : i32
    return %c0_i32, %arg1 : i32, i32
  }
  func.func @transform_5(%arg0: i32, %arg1: i32) -> (i32, i32) {
    %c0_i32 = arith.constant 0 : i32
    return %arg0, %arg1 : i32, i32
  }
}

</mosaic_0001>

<bundles_post_ra>
// kernel: tpu_custom_call.1
= control target key start
LH: loop header
LB: loop body
LE: loop exit
PB: predicated region body
PF: predicated region fallthrough
CT: control target
= control target key end

     0   :  { %v4144_v2 = vmov 0.0   ;;  %vm287_vm0 = vcmask 523264   ;;  %vm4145_vm1 = vmmov 0   ;;  %s5886_s0 = inlined_call_operand.vmem [shape: f32[1000,64], index: 0, kind: input, shape index: {}]   ;;  %s5887_s1 = inlined_call_operand.vmem [shape: f32[1000,64], index: 1, kind: input, shape index: {}]   ;;  %s5888_s2 = inlined_call_operand.vmem [shape: f32[64,128], index: 2, kind: input, shape index: {}]   ;;  %s5889_s3 = inlined_call_operand.vmem [shape: f32[64,128], index: 3, kind: input, shape index: {}]   ;;  %s5890_s4 = inlined_call_operand.vmem [shape: f32[1,128], index: 4, kind: input, shape index: {}]   ;;  %s5891_s5 = inlined_call_operand.hbm [shape: f32[1000,128], index: 5, kind: output, shape index: {}]  }
   0x1   :  { %v286_v0 = vld [vmem:[%s5889_s3 + $0x38] sm:$0xff]  ;;  %3333 = vmatprep.subr.mxu0 %v4144_v2  ;;  %3724 = vmatprep.subr.mxu1 %v4144_v2  ;;  %v285_v3 = vld [vmem:[%s5889_s3 + $0x30] sm:$0xff]  ;;  %v284_v5 = vld [vmem:[%s5889_s3 + $0x28] sm:$0xff] }
   0x2   :  { %v153_v1 = vld [vmem:[%s5888_s2 + $0x38] sm:$0xff]  ;;  %v152_v4 = vld [vmem:[%s5888_s2 + $0x30] sm:$0xff]  ;;  %3334 = vmatpush3.msra.mxu0 %v286_v0  ;;  %v151_v6 = vld [vmem:[%s5888_s2 + $0x28] sm:$0xff]  ;;  %3349 = vmatprep.mubr.msk.f32.mxu0 %vm4145_vm1, %v4144_v2 }
   0x3   :  { %3725 = vmatpush3.msra.mxu1 %v153_v1  ;;  %3335 = vmatprep.subr.mxu0 %v4144_v2  ;;  %v283_v7 = vld [vmem:[%s5889_s3 + $0x20] sm:$0xff]  ;;  %v282_v9 = vld [vmem:[%s5889_s3 + $0x18] sm:$0xff]  ;;  %v281_v11 = vld [vmem:[%s5889_s3 + $0x10] sm:$0xff] }
   0x4   :  { %3726 = vmatprep.subr.mxu1 %v4144_v2  ;;  %3336 = vmatpush3.msra.mxu0 %v285_v3  ;;  %v150_v8 = vld [vmem:[%s5888_s2 + $0x20] sm:$0xff]  ;;  %v149_v10 = vld [vmem:[%s5888_s2 + $0x18] sm:$0xff]  ;;  %v148_v12 = vld [vmem:[%s5888_s2 + $0x10] sm:$0xff] }
   0x5   :  { %3727 = vmatpush3.msra.mxu1 %v152_v4  ;;  %3337 = vmatprep.subr.mxu0 %v4144_v2  ;;  %v280_v13 = vld [vmem:[%s5889_s3 + $0x8] sm:$0xff]  ;;  %v279_v15 = vld [vmem:[%s5889_s3] sm:$0xff]  ;;  %v156_v21 = vld [vmem:[%s5887_s1 + $0x10] sm:$0xff] }
   0x6   :  { %3728 = vmatprep.subr.mxu1 %v4144_v2  ;;  %3338 = vmatpush3.msra.mxu0 %v284_v5  ;;  %v147_v14 = vld [vmem:[%s5888_s2 + $0x8] sm:$0xff]  ;;  %v146_v16 = vld [vmem:[%s5888_s2] sm:$0xff]  ;;  %v23_v22 = vld [vmem:[%s5886_s0 + $0x10] sm:$0xff] }
   0x7   :  { %3729 = vmatpush3.msra.mxu1 %v151_v6  ;;  %3339 = vmatprep.subr.mxu0 %v4144_v2  ;;  %v154_v17 = vld [vmem:[%s5887_s1] sm:$0xff]  ;;  %v155_v19 = vld [vmem:[%s5887_s1 + $0x8] sm:$0xff]  ;;  %v157_v23 = vld [vmem:[%s5887_s1 + $0x18] sm:$0xff] }
   0x8   :  { %3730 = vmatprep.subr.mxu1 %v4144_v2  ;;  %3340 = vmatpush3.msra.mxu0 %v283_v7  ;;  %v21_v18 = vld [vmem:[%s5886_s0] sm:$0xff]  ;;  %v22_v20 = vld [vmem:[%s5886_s0 + $0x8] sm:$0xff]  ;;  %v24_v24 = vld [vmem:[%s5886_s0 + $0x18] sm:$0xff] }
   0x9   :  { %3731 = vmatpush3.msra.mxu1 %v150_v8  ;;  %3341 = vmatprep.subr.mxu0 %v4144_v2 }
   0xa   :  { %3732 = vmatprep.subr.mxu1 %v4144_v2  ;;  %3342 = vmatpush3.msra.mxu0 %v282_v9 }
   0xb   :  { %3733 = vmatpush3.msra.mxu1 %v149_v10  ;;  %3343 = vmatprep.subr.mxu0 %v4144_v2 }
   0xc   :  { %3734 = vmatprep.subr.mxu1 %v4144_v2  ;;  %3344 = vmatpush3.msra.mxu0 %v281_v11 }
   0xd   :  { %3735 = vmatpush3.msra.mxu1 %v148_v12  ;;  %3345 = vmatprep.subr.mxu0 %v4144_v2 }
   0xe   :  { %3736 = vmatprep.subr.mxu1 %v4144_v2  ;;  %3346 = vmatpush3.msra.mxu0 %v280_v13 }
   0xf   :  { %3737 = vmatpush3.msra.mxu1 %v147_v14  ;;  %3347 = vmatprep.subr.mxu0 %v4144_v2 }
  0x10   :  { %3738 = vmatprep.subr.mxu1 %v4144_v2  ;;  %3348 = vmatpush3.msra.mxu0 %v279_v15 }
  0x11   :  { %3739 = vmatpush3.msra.mxu1 %v146_v16  ;;  %3740 = vmatprep.mubr.msk.f32.mxu1 %vm4145_vm1, %v4144_v2 }
  0x12   :  { %3350 = vmatmul.mubr.msk.f32.vlgmr.msra.gmra.mxu0 %vm287_vm0, %v154_v17  ;;  %3741 = vmatmul.mubr.msk.f32.vlgmr.msra.gmra.mxu1 %vm287_vm0, %v21_v18 }
  0x13   :  { %3352 = vmatprep.mubr.msk.f32.mxu0 %vm4145_vm1, %v4144_v2  ;;  %3743 = vmatprep.mubr.msk.f32.mxu1 %vm4145_vm1, %v4144_v2 }
  0x16   :  { %3353 = vmatmul.mubr.msk.f32.gmra.mxu0 %vm287_vm0, %v155_v19  ;;  %3744 = vmatmul.mubr.msk.f32.gmra.mxu1 %vm287_vm0, %v22_v20 }
  0x17   :  { %3355 = vmatprep.mubr.msk.f32.mxu0 %vm4145_vm1, %v4144_v2  ;;  %3746 = vmatprep.mubr.msk.f32.mxu1 %vm4145_vm1, %v4144_v2 }
  0x1a   :  { %3356 = vmatmul.mubr.msk.f32.gmra.mxu0 %vm287_vm0, %v156_v21  ;;  %3747 = vmatmul.mubr.msk.f32.gmra.mxu1 %vm287_vm0, %v23_v22 }
  0x1b   :  { %3358 = vmatprep.mubr.msk.f32.mxu0 %vm4145_vm1, %v4144_v2  ;;  %3749 = vmatprep.mubr.msk.f32.mxu1 %vm4145_vm1, %v4144_v2 }
  0x1c   :  { %10 = vsyncpa [#allocation3], 0  ;;  %v158_v25 = vld [vmem:[%s5887_s1 + $0x20] sm:$0xff]  ;;  %v159_v27 = vld [vmem:[%s5887_s1 + $0x28] sm:$0xff] }
  0x1d   :  { %v25_v26 = vld [vmem:[%s5886_s0 + $0x20] sm:$0xff]  ;;  %v26_v28 = vld [vmem:[%s5886_s0 + $0x28] sm:$0xff]  ;;  %v160_v29 = vld [vmem:[%s5887_s1 + $0x30] sm:$0xff] }
  0x1e   :  { %3359 = vmatmul.mubr.msk.f32.gmra.mxu0 %vm287_vm0, %v157_v23  ;;  %3750 = vmatmul.mubr.msk.f32.gmra.mxu1 %vm287_vm0, %v24_v24  ;;  %v27_v30 = vld [vmem:[%s5886_s0 + $0x30] sm:$0xff]  ;;  %v161_v31 = vld [vmem:[%s5887_s1 + $0x38] sm:$0xff]  ;;  %v162_v33 = vld [vmem:[%s5887_s1 + $0x40] sm:$0xff] }
  0x1f   :  { %3361 = vmatprep.mubr.msk.f32.mxu0 %vm4145_vm1, %v4144_v2  ;;  %3752 = vmatprep.mubr.msk.f32.mxu1 %vm4145_vm1, %v4144_v2  ;;  %v28_v32 = vld [vmem:[%s5886_s0 + $0x38] sm:$0xff]  ;;  %v29_v34 = vld [vmem:[%s5886_s0 + $0x40] sm:$0xff]  ;;  %v163_v35 = vld [vmem:[%s5887_s1 + $0x48] sm:$0xff] }
  0x20   :  { %v30_v36 = vld [vmem:[%s5886_s0 + $0x48] sm:$0xff]  ;;  %v164_v37 = vld [vmem:[%s5887_s1 + $0x50] sm:$0xff]  ;;  %v165_v39 = vld [vmem:[%s5887_s1 + $0x58] sm:$0xff] }
  0x21   :  { %v31_v38 = vld [vmem:[%s5886_s0 + $0x50] sm:$0xff]  ;;  %v32_v40 = vld [vmem:[%s5886_s0 + $0x58] sm:$0xff]  ;;  %v166_v41 = vld [vmem:[%s5887_s1 + $0x60] sm:$0xff] }
  0x22   :  { %3362 = vmatmul.mubr.msk.f32.gmra.mxu0 %vm287_vm0, %v158_v25  ;;  %3753 = vmatmul.mubr.msk.f32.gmra.mxu1 %vm287_vm0, %v25_v26  ;;  %v33_v42 = vld [vmem:[%s5886_s0 + $0x60] sm:$0xff]  ;;  %v167_v43 = vld [vmem:[%s5887_s1 + $0x68] sm:$0xff]  ;;  %v168_v45 = vld [vmem:[%s5887_s1 + $0x70] sm:$0xff] }
  0x23   :  { %3364 = vmatprep.mubr.msk.f32.mxu0 %vm4145_vm1, %v4144_v2  ;;  %3755 = vmatprep.mubr.msk.f32.mxu1 %vm4145_vm1, %v4144_v2  ;;  %v34_v44 = vld [vmem:[%s5886_s0 + $0x68] sm:$0xff]  ;;  %v35_v46 = vld [vmem:[%s5886_s0 + $0x70] sm:$0xff]  ;;  %v169_v47 = vld [vmem:[%s5887_s1 + $0x78] sm:$0xff] }
  0x24   :  { %v36_v48 = vld [vmem:[%s5886_s0 + $0x78] sm:$0xff]  ;;  %v170_v49 = vld [vmem:[%s5887_s1 + $0x80] sm:$0xff]  ;;  %v171_v51 = vld [vmem:[%s5887_s1 + $0x88] sm:$0xff] }
  0x25   :  { %v37_v50 = vld [vmem:[%s5886_s0 + $0x80] sm:$0xff]  ;;  %v38_v52 = vld [vmem:[%s5886_s0 + $0x88] sm:$0xff]  ;;  %v172_v53 = vld [vmem:[%s5887_s1 + $0x90] sm:$0xff] }
  0x26   :  { %3365 = vmatmul.mubr.msk.f32.gmra.mxu0 %vm287_vm0, %v159_v27  ;;  %3756 = vmatmul.mubr.msk.f32.gmra.mxu1 %vm287_vm0, %v26_v28  ;;  %v39_v54 = vld [vmem:[%s5886_s0 + $0x90] sm:$0xff]  ;;  %v173_v55 = vld [vmem:[%s5887_s1 + $0x98] sm:$0xff]  ;;  %v174_v57 = vld [vmem:[%s5887_s1 + $0xa0] sm:$0xff] }
  0x27   :  { %3367 = vmatprep.mubr.msk.f32.mxu0 %vm4145_vm1, %v4144_v2  ;;  %3758 = vmatprep.mubr.msk.f32.mxu1 %vm4145_vm1, %v4144_v2  ;;  %v40_v56 = vld [vmem:[%s5886_s0 + $0x98] sm:$0xff]  ;;  %v41_v58 = vld [vmem:[%s5886_s0 + $0xa0] sm:$0xff]  ;;  %v175_v59 = vld [vmem:[%s5887_s1 + $0xa8] sm:$0xff] }
  0x28   :  { %v42_v60 = vld [vmem:[%s5886_s0 + $0xa8] sm:$0xff]  ;;  %v176_v61 = vld [vmem:[%s5887_s1 + $0xb0] sm:$0xff]  ;;  %v177_v63 = vld [vmem:[%s5887_s1 + $0xb8] sm:$0xff] }
  0x29   :  { %v43_v62 = vld [vmem:[%s5886_s0 + $0xb0] sm:$0xff]  ;;  %v44_v0 = vld [vmem:[%s5886_s0 + $0xb8] sm:$0xff]  ;;  %v178_v1 = vld [vmem:[%s5887_s1 + $0xc0] sm:$0xff] }
  0x2a   :  { %3368 = vmatmul.mubr.msk.f32.gmra.mxu0 %vm287_vm0, %v160_v29  ;;  %3759 = vmatmul.mubr.msk.f32.gmra.mxu1 %vm287_vm0, %v27_v30  ;;  %v45_v3 = vld [vmem:[%s5886_s0 + $0xc0] sm:$0xff]  ;;  %v179_v4 = vld [vmem:[%s5887_s1 + $0xc8] sm:$0xff]  ;;  %v180_v6 = vld [vmem:[%s5887_s1 + $0xd0] sm:$0xff] }
  0x2b   :  { %3370 = vmatprep.mubr.msk.f32.mxu0 %vm4145_vm1, %v4144_v2  ;;  %3761 = vmatprep.mubr.msk.f32.mxu1 %vm4145_vm1, %v4144_v2  ;;  %v46_v5 = vld [vmem:[%s5886_s0 + $0xc8] sm:$0xff]  ;;  %v47_v7 = vld [vmem:[%s5886_s0 + $0xd0] sm:$0xff]  ;;  %v181_v8 = vld [vmem:[%s5887_s1 + $0xd8] sm:$0xff] }
  0x2c   :  { %v48_v9 = vld [vmem:[%s5886_s0 + $0xd8] sm:$0xff]  ;;  %v182_v10 = vld [vmem:[%s5887_s1 + $0xe0] sm:$0xff]  ;;  %v183_v12 = vld [vmem:[%s5887_s1 + $0xe8] sm:$0xff] }
  0x2d   :  { %v49_v11 = vld [vmem:[%s5886_s0 + $0xe0] sm:$0xff]  ;;  %v50_v13 = vld [vmem:[%s5886_s0 + $0xe8] sm:$0xff]  ;;  %v184_v14 = vld [vmem:[%s5887_s1 + $0xf0] sm:$0xff] }
  0x2e   :  { %3371 = vmatmul.mubr.msk.f32.gmra.mxu0 %vm287_vm0, %v161_v31  ;;  %3762 = vmatmul.mubr.msk.f32.gmra.mxu1 %vm287_vm0, %v28_v32  ;;  %v51_v15 = vld [vmem:[%s5886_s0 + $0xf0] sm:$0xff]  ;;  %v185_v16 = vld [vmem:[%s5887_s1 + $0xf8] sm:$0xff]  ;;  %v186_v18 = vld [vmem:[%s5887_s1 + $0x100] sm:$0xff] }
  0x2f   :  { %3373 = vmatprep.mubr.msk.f32.mxu0 %vm4145_vm1, %v4144_v2  ;;  %3764 = vmatprep.mubr.msk.f32.mxu1 %vm4145_vm1, %v4144_v2  ;;  %v52_v17 = vld [vmem:[%s5886_s0 + $0xf8] sm:$0xff]  ;;  %v53_v19 = vld [vmem:[%s5886_s0 + $0x100] sm:$0xff]  ;;  %v187_v20 = vld [vmem:[%s5887_s1 + $0x108] sm:$0xff] }
  0x30   :  { %v54_v21 = vld [vmem:[%s5886_s0 + $0x108] sm:$0xff]  ;;  %v188_v22 = vld [vmem:[%s5887_s1 + $0x110] sm:$0xff]  ;;  %v189_v24 = vld [vmem:[%s5887_s1 + $0x118] sm:$0xff] }
  0x31   :  { %v55_v23 = vld [vmem:[%s5886_s0 + $0x110] sm:$0xff]  ;;  %v56_v25 = vld [vmem:[%s5886_s0 + $0x118] sm:$0xff]  ;;  %v190_v26 = vld [vmem:[%s5887_s1 + $0x120] sm:$0xff] }
  0x32   :  { %3374 = vmatmul.mubr.msk.f32.gmra.mxu0 %vm287_vm0, %v162_v33  ;;  %3765 = vmatmul.mubr.msk.f32.gmra.mxu1 %vm287_vm0, %v29_v34  ;;  %v57_v27 = vld [vmem:[%s5886_s0 + $0x120] sm:$0xff]  ;;  %v191_v28 = vld [vmem:[%s5887_s1 + $0x128] sm:$0xff]  ;;  %v192_v30 = vld [vmem:[%s5887_s1 + $0x130] sm:$0xff] }
  0x33   :  { %3376 = vmatprep.mubr.msk.f32.mxu0 %vm4145_vm1, %v4144_v2  ;;  %3767 = vmatprep.mubr.msk.f32.mxu1 %vm4145_vm1, %v4144_v2  ;;  %v58_v29 = vld [vmem:[%s5886_s0 + $0x128] sm:$0xff]  ;;  %v59_v31 = vld [vmem:[%s5886_s0 + $0x130] sm:$0xff]  ;;  %v193_v32 = vld [vmem:[%s5887_s1 + $0x138] sm:$0xff] }
  0x34   :  { %v60_v33 = vld [vmem:[%s5886_s0 + $0x138] sm:$0xff]  ;;  %v194_v34 = vld [vmem:[%s5887_s1 + $0x140] sm:$0xff] }
  0x36   :  { %3377 = vmatmul.mubr.msk.f32.gmra.mxu0 %vm287_vm0, %v163_v35  ;;  %3768 = vmatmul.mubr.msk.f32.gmra.mxu1 %vm287_vm0, %v30_v36  ;;  %v61_v35 = vld [vmem:[%s5886_s0 + $0x140] sm:$0xff]  ;;  %v195_v36 = vld [vmem:[%s5887_s1 + $0x148] sm:$0xff] }
  0x37   :  { %3379 = vmatprep.mubr.msk.f32.mxu0 %vm4145_vm1, %v4144_v2  ;;  %3770 = vmatprep.mubr.msk.f32.mxu1 %vm4145_vm1, %v4144_v2 }
  0x3a   :  { %3380 = vmatmul.mubr.msk.f32.gmra.mxu0 %vm287_vm0, %v164_v37  ;;  %3771 = vmatmul.mubr.msk.f32.gmra.mxu1 %vm287_vm0, %v31_v38  ;;  %v62_v37 = vld [vmem:[%s5886_s0 + $0x148] sm:$0xff]  ;;  %v196_v38 = vld [vmem:[%s5887_s1 + $0x150] sm:$0xff] }
  0x3b   :  { %3382 = vmatprep.mubr.msk.f32.mxu0 %vm4145_vm1, %v4144_v2  ;;  %3773 = vmatprep.mubr.msk.f32.mxu1 %vm4145_vm1, %v4144_v2 }
  0x3e   :  { %3383 = vmatmul.mubr.msk.f32.gmra.mxu0 %vm287_vm0, %v165_v39  ;;  %3774 = vmatmul.mubr.msk.f32.gmra.mxu1 %vm287_vm0, %v32_v40  ;;  %v63_v39 = vld [vmem:[%s5886_s0 + $0x150] sm:$0xff]  ;;  %v197_v40 = vld [vmem:[%s5887_s1 + $0x158] sm:$0xff] }
  0x3f   :  { %3385 = vmatprep.mubr.msk.f32.mxu0 %vm4145_vm1, %v4144_v2  ;;  %3776 = vmatprep.mubr.msk.f32.mxu1 %vm4145_vm1, %v4144_v2 }
  0x42   :  { %3386 = vmatmul.mubr.msk.f32.gmra.mxu0 %vm287_vm0, %v166_v41  ;;  %3777 = vmatmul.mubr.msk.f32.gmra.mxu1 %vm287_vm0, %v33_v42  ;;  %v64_v41 = vld [vmem:[%s5886_s0 + $0x158] sm:$0xff]  ;;  %v198_v42 = vld [vmem:[%s5887_s1 + $0x160] sm:$0xff] }
  0x43   :  { %3388 = vmatprep.mubr.msk.f32.mxu0 %vm4145_vm1, %v4144_v2  ;;  %3779 = vmatprep.mubr.msk.f32.mxu1 %vm4145_vm1, %v4144_v2 }
  0x46   :  { %3389 = vmatmul.mubr.msk.f32.gmra.mxu0 %vm287_vm0, %v167_v43  ;;  %3780 = vmatmul.mubr.msk.f32.gmra.mxu1 %vm287_vm0, %v34_v44  ;;  %v65_v43 = vld [vmem:[%s5886_s0 + $0x160] sm:$0xff]  ;;  %v199_v44 = vld [vmem:[%s5887_s1 + $0x168] sm:$0xff] }
  0x47   :  { %3391 = vmatprep.mubr.msk.f32.mxu0 %vm4145_vm1, %v4144_v2  ;;  %3782 = vmatprep.mubr.msk.f32.mxu1 %vm4145_vm1, %v4144_v2 }
  0x4a   :  { %3392 = vmatmul.mubr.msk.f32.gmra.mxu0 %vm287_vm0, %v168_v45  ;;  %3783 = vmatmul.mubr.msk.f32.gmra.mxu1 %vm287_vm0, %v35_v46  ;;  %v66_v45 = vld [vmem:[%s5886_s0 + $0x168] sm:$0xff]  ;;  %v200_v46 = vld [vmem:[%s5887_s1 + $0x170] sm:$0xff] }
  0x4b   :  { %3394 = vmatprep.mubr.msk.f32.mxu0 %vm4145_vm1, %v4144_v2  ;;  %3785 = vmatprep.mubr.msk.f32.mxu1 %vm4145_vm1, %v4144_v2 }
  0x4e   :  { %3395 = vmatmul.mubr.msk.f32.gmra.mxu0 %vm287_vm0, %v169_v47  ;;  %3786 = vmatmul.mubr.msk.f32.gmra.mxu1 %vm287_vm0, %v36_v48  ;;  %v67_v47 = vld [vmem:[%s5886_s0 + $0x170] sm:$0xff]  ;;  %v201_v48 = vld [vmem:[%s5887_s1 + $0x178] sm:$0xff] }
  0x4f   :  { %3397 = vmatprep.mubr.msk.f32.mxu0 %vm4145_vm1, %v4144_v2  ;;  %3788 = vmatprep.mubr.msk.f32.mxu1 %vm4145_vm1, %v4144_v2 }
  0x52   :  { %3398 = vmatmul.mubr.msk.f32.gmra.mxu0 %vm287_vm0, %v170_v49  ;;  %3789 = vmatmul.mubr.msk.f32.gmra.mxu1 %vm287_vm0, %v37_v50  ;;  %v68_v49 = vld [vmem:[%s5886_s0 + $0x178] sm:$0xff]  ;;  %v202_v50 = vld [vmem:[%s5887_s1 + $0x180] sm:$0xff] }
  0x53   :  { %3400 = vmatprep.mubr.msk.f32.mxu0 %vm4145_vm1, %v4144_v2  ;;  %3791 = vmatprep.mubr.msk.f32.mxu1 %vm4145_vm1, %v4144_v2 }
  0x56   :  { %3401 = vmatmul.mubr.msk.f32.gmra.mxu0 %vm287_vm0, %v171_v51  ;;  %3792 = vmatmul.mubr.msk.f32.gmra.mxu1 %vm287_vm0, %v38_v52  ;;  %v69_v51 = vld [vmem:[%s5886_s0 + $0x180] sm:$0xff] }
  0x57   :  { %3403 = vmatprep.mubr.msk.f32.mxu0 %vm4145_vm1, %v4144_v2  ;;  %3794 = vmatprep.mubr.msk.f32.mxu1 %vm4145_vm1, %v4144_v2 }
  0x5a   :  { %3404 = vmatmul.mubr.msk.f32.gmra.mxu0 %vm287_vm0, %v172_v53  ;;  %3795 = vmatmul.mubr.msk.f32.gmra.mxu1 %vm287_vm0, %v39_v54  ;;  %v4833_v54 = vld [vmem:[%s5890_s4] ss:$0 sm:$0xff] }
  0x5b   :  { %3406 = vmatprep.mubr.msk.f32.mxu0 %vm4145_vm1, %v4144_v2  ;;  %3797 = vmatprep.mubr.msk.f32.mxu1 %vm4145_vm1, %v4144_v2 }
  0x5e   :  { %3407 = vmatmul.mubr.msk.f32.gmra.mxu0 %vm287_vm0, %v173_v55  ;;  %3798 = vmatmul.mubr.msk.f32.gmra.mxu1 %vm287_vm0, %v40_v56  ;;  %v203_v56 = vld [vmem:[%s5887_s1 + $0x188] sm:$0xff] }
  0x5f   :  { %3409 = vmatprep.mubr.msk.f32.mxu0 %vm4145_vm1, %v4144_v2  ;;  %3800 = vmatprep.mubr.msk.f32.mxu1 %vm4145_vm1, %v4144_v2 }
  0x62   :  { %3410 = vmatmul.mubr.msk.f32.gmra.mxu0 %vm287_vm0, %v174_v57  ;;  %3801 = vmatmul.mubr.msk.f32.gmra.mxu1 %vm287_vm0, %v41_v58  ;;  %v70_v57 = vld [vmem:[%s5886_s0 + $0x188] sm:$0xff] }
  0x63   :  { %3412 = vmatprep.mubr.msk.f32.mxu0 %vm4145_vm1, %v4144_v2  ;;  %3803 = vmatprep.mubr.msk.f32.mxu1 %vm4145_vm1, %v4144_v2 }
  0x66   :  { %3413 = vmatmul.mubr.msk.f32.gmra.mxu0 %vm287_vm0, %v175_v59  ;;  %3804 = vmatmul.mubr.msk.f32.gmra.mxu1 %vm287_vm0, %v42_v60 }
  0x67   :  { %3415 = vmatprep.mubr.msk.f32.mxu0 %vm4145_vm1, %v4144_v2  ;;  %3806 = vmatprep.mubr.msk.f32.mxu1 %vm4145_vm1, %v4144_v2 }
  0x6a   :  { %3416 = vmatmul.mubr.msk.f32.gmra.mxu0 %vm287_vm0, %v176_v61  ;;  %3807 = vmatmul.mubr.msk.f32.gmra.mxu1 %vm287_vm0, %v43_v62 }
  0x6b   :  { %3418 = vmatprep.mubr.msk.f32.mxu0 %vm4145_vm1, %v4144_v2  ;;  %3809 = vmatprep.mubr.msk.f32.mxu1 %vm4145_vm1, %v4144_v2 }
  0x6e   :  { %3419 = vmatmul.mubr.msk.f32.gmra.mxu0 %vm287_vm0, %v177_v63  ;;  %3810 = vmatmul.mubr.msk.f32.gmra.mxu1 %vm287_vm0, %v44_v0 }
  0x6f   :  { %3421 = vmatprep.mubr.msk.f32.mxu0 %vm4145_vm1, %v4144_v2  ;;  %3812 = vmatprep.mubr.msk.f32.mxu1 %vm4145_vm1, %v4144_v2 }
  0x72   :  { %3422 = vmatmul.mubr.msk.f32.gmra.mxu0 %vm287_vm0, %v178_v1  ;;  %3813 = vmatmul.mubr.msk.f32.gmra.mxu1 %vm287_vm0, %v45_v3  ;;  %v204_v1 = vld [vmem:[%s5887_s1 + $0x190] sm:$0xff] }
  0x73   :  { %3424 = vmatprep.mubr.msk.f32.mxu0 %vm4145_vm1, %v4144_v2  ;;  %3815 = vmatprep.mubr.msk.f32.mxu1 %vm4145_vm1, %v4144_v2  ;;  %v71_v3 = vld [vmem:[%s5886_s0 + $0x190] sm:$0xff] }
  0x76   :  { %3425 = vmatmul.mubr.msk.f32.gmra.mxu0 %vm287_vm0, %v179_v4  ;;  %3816 = vmatmul.mubr.msk.f32.gmra.mxu1 %vm287_vm0, %v46_v5 }
  0x77   :  { %3427 = vmatprep.mubr.msk.f32.mxu0 %vm4145_vm1, %v4144_v2  ;;  %3818 = vmatprep.mubr.msk.f32.mxu1 %vm4145_vm1, %v4144_v2 }
  0x7a   :  { %3428 = vmatmul.mubr.msk.f32.gmra.mxu0 %vm287_vm0, %v180_v6  ;;  %3819 = vmatmul.mubr.msk.f32.gmra.mxu1 %vm287_vm0, %v47_v7 }
  0x7b   :  { %3430 = vmatprep.mubr.msk.f32.mxu0 %vm4145_vm1, %v4144_v2  ;;  %3821 = vmatprep.mubr.msk.f32.mxu1 %vm4145_vm1, %v4144_v2 }
  0x7e   :  { %3431 = vmatmul.mubr.msk.f32.gmra.mxu0 %vm287_vm0, %v181_v8  ;;  %3822 = vmatmul.mubr.msk.f32.gmra.mxu1 %vm287_vm0, %v48_v9 }
  0x7f   :  { %3433 = vmatprep.mubr.msk.f32.mxu0 %vm4145_vm1, %v4144_v2  ;;  %3824 = vmatprep.mubr.msk.f32.mxu1 %vm4145_vm1, %v4144_v2 }
  0x82   :  { %3434 = vmatmul.mubr.msk.f32.gmra.mxu0 %vm287_vm0, %v182_v10  ;;  %3825 = vmatmul.mubr.msk.f32.gmra.mxu1 %vm287_vm0, %v49_v11  ;;  %v205_v11 = vld [vmem:[%s5887_s1 + $0x198] sm:$0xff] }
  0x83   :  { %3436 = vmatprep.mubr.msk.f32.mxu0 %vm4145_vm1, %v4144_v2  ;;  %3827 = vmatprep.mubr.msk.f32.mxu1 %vm4145_vm1, %v4144_v2 }
  0x86   :  { %3437 = vmatmul.mubr.msk.f32.gmra.mxu0 %vm287_vm0, %v183_v12  ;;  %3828 = vmatmul.mubr.msk.f32.gmra.mxu1 %vm287_vm0, %v50_v13  ;;  %v72_v12 = vld [vmem:[%s5886_s0 + $0x198] sm:$0xff] }
  0x87   :  { %3439 = vmatprep.mubr.msk.f32.mxu0 %vm4145_vm1, %v4144_v2  ;;  %3830 = vmatprep.mubr.msk.f32.mxu1 %vm4145_vm1, %v4144_v2 }
  0x8a   :  { %3440 = vmatmul.mubr.msk.f32.gmra.mxu0 %vm287_vm0, %v184_v14  ;;  %3831 = vmatmul.mubr.msk.f32.gmra.mxu1 %vm287_vm0, %v51_v15 }
  0x8b   :  { %3442 = vmatprep.mubr.msk.f32.mxu0 %vm4145_vm1, %v4144_v2  ;;  %3833 = vmatprep.mubr.msk.f32.mxu1 %vm4145_vm1, %v4144_v2 }
  0x8e   :  { %3443 = vmatmul.mubr.msk.f32.gmra.mxu0 %vm287_vm0, %v185_v16  ;;  %3834 = vmatmul.mubr.msk.f32.gmra.mxu1 %vm287_vm0, %v52_v17 }
  0x8f   :  { %3445 = vmatprep.mubr.msk.f32.mxu0 %vm4145_vm1, %v4144_v2  ;;  %3836 = vmatprep.mubr.msk.f32.mxu1 %vm4145_vm1, %v4144_v2 }
  0x92   :  { %3446 = vmatmul.mubr.msk.f32.gmra.mxu0 %vm287_vm0, %v186_v18  ;;  %3837 = vmatmul.mubr.msk.f32.gmra.mxu1 %vm287_vm0, %v53_v19 }
  0x93   :  { %3448 = vmatprep.mubr.msk.f32.mxu0 %vm4145_vm1, %v4144_v2  ;;  %3839 = vmatprep.mubr.msk.f32.mxu1 %vm4145_vm1, %v4144_v2 }
  0x96   :  { %3449 = vmatmul.mubr.msk.f32.gmra.mxu0 %vm287_vm0, %v187_v20  ;;  %3840 = vmatmul.mubr.msk.f32.gmra.mxu1 %vm287_vm0, %v54_v21  ;;  %v206_v20 = vld [vmem:[%s5887_s1 + $0x1a0] sm:$0xff] }
  0x97   :  { %3451 = vmatprep.mubr.msk.f32.mxu0 %vm4145_vm1, %v4144_v2  ;;  %3842 = vmatprep.mubr.msk.f32.mxu1 %vm4145_vm1, %v4144_v2  ;;  %v73_v21 = vld [vmem:[%s5886_s0 + $0x1a0] sm:$0xff] }
  0x9a   :  { %3452 = vmatmul.mubr.msk.f32.gmra.mxu0 %vm287_vm0, %v188_v22  ;;  %3843 = vmatmul.mubr.msk.f32.gmra.mxu1 %vm287_vm0, %v55_v23 }
  0x9b   :  { %3454 = vmatprep.mubr.msk.f32.mxu0 %vm4145_vm1, %v4144_v2  ;;  %3845 = vmatprep.mubr.msk.f32.mxu1 %vm4145_vm1, %v4144_v2 }
  0x9e   :  { %3455 = vmatmul.mubr.msk.f32.gmra.mxu0 %vm287_vm0, %v189_v24  ;;  %3846 = vmatmul.mubr.msk.f32.gmra.mxu1 %vm287_vm0, %v56_v25 }
  0x9f   :  { %3457 = vmatprep.mubr.msk.f32.mxu0 %vm4145_vm1, %v4144_v2  ;;  %3848 = vmatprep.mubr.msk.f32.mxu1 %vm4145_vm1, %v4144_v2 }
  0xa2   :  { %3458 = vmatmul.mubr.msk.f32.gmra.mxu0 %vm287_vm0, %v190_v26  ;;  %3849 = vmatmul.mubr.msk.f32.gmra.mxu1 %vm287_vm0, %v57_v27 }
  0xa3   :  { %3460 = vmatprep.mubr.msk.f32.mxu0 %vm4145_vm1, %v4144_v2  ;;  %3851 = vmatprep.mubr.msk.f32.mxu1 %vm4145_vm1, %v4144_v2 }
  0xa6   :  { %3461 = vmatmul.mubr.msk.f32.gmra.mxu0 %vm287_vm0, %v191_v28  ;;  %3852 = vmatmul.mubr.msk.f32.gmra.mxu1 %vm287_vm0, %v58_v29  ;;  %v207_v29 = vld [vmem:[%s5887_s1 + $0x1a8] sm:$0xff] }
  0xa7   :  { %3463 = vmatprep.mubr.msk.f32.mxu0 %vm4145_vm1, %v4144_v2  ;;  %3854 = vmatprep.mubr.msk.f32.mxu1 %vm4145_vm1, %v4144_v2 }
  0xaa   :  { %3464 = vmatmul.mubr.msk.f32.gmra.mxu0 %vm287_vm0, %v192_v30  ;;  %3855 = vmatmul.mubr.msk.f32.gmra.mxu1 %vm287_vm0, %v59_v31  ;;  %v74_v30 = vld [vmem:[%s5886_s0 + $0x1a8] sm:$0xff] }
  0xab   :  { %3466 = vmatprep.mubr.msk.f32.mxu0 %vm4145_vm1, %v4144_v2  ;;  %3857 = vmatprep.mubr.msk.f32.mxu1 %vm4145_vm1, %v4144_v2 }
  0xae   :  { %3467 = vmatmul.mubr.msk.f32.gmra.mxu0 %vm287_vm0, %v193_v32  ;;  %3858 = vmatmul.mubr.msk.f32.gmra.mxu1 %vm287_vm0, %v60_v33 }
  0xaf   :  { %3469 = vmatprep.mubr.msk.f32.mxu0 %vm4145_vm1, %v4144_v2  ;;  %3860 = vmatprep.mubr.msk.f32.mxu1 %vm4145_vm1, %v4144_v2 }
  0xb2   :  { %3470 = vmatmul.mubr.msk.f32.gmra.mxu0 %vm287_vm0, %v194_v34  ;;  %3861 = vmatmul.mubr.msk.f32.gmra.mxu1 %vm287_vm0, %v61_v35 }
  0xb3   :  { %3472 = vmatprep.mubr.msk.f32.mxu0 %vm4145_vm1, %v4144_v2  ;;  %3863 = vmatprep.mubr.msk.f32.mxu1 %vm4145_vm1, %v4144_v2 }
  0xb6   :  { %3473 = vmatmul.mubr.msk.f32.gmra.mxu0 %vm287_vm0, %v195_v36  ;;  %3864 = vmatmul.mubr.msk.f32.gmra.mxu1 %vm287_vm0, %v62_v37 }
  0xb7   :  { %3475 = vmatprep.mubr.msk.f32.mxu0 %vm4145_vm1, %v4144_v2  ;;  %3866 = vmatprep.mubr.msk.f32.mxu1 %vm4145_vm1, %v4144_v2 }
  0xba   :  { %3476 = vmatmul.mubr.msk.f32.gmra.mxu0 %vm287_vm0, %v196_v38  ;;  %3867 = vmatmul.mubr.msk.f32.gmra.mxu1 %vm287_vm0, %v63_v39  ;;  %v208_v38 = vld [vmem:[%s5887_s1 + $0x1b0] sm:$0xff] }
  0xbb   :  { %3478 = vmatprep.mubr.msk.f32.mxu0 %vm4145_vm1, %v4144_v2  ;;  %3869 = vmatprep.mubr.msk.f32.mxu1 %vm4145_vm1, %v4144_v2  ;;  %v75_v39 = vld [vmem:[%s5886_s0 + $0x1b0] sm:$0xff] }
  0xbe   :  { %3479 = vmatmul.mubr.msk.f32.gmra.mxu0 %vm287_vm0, %v197_v40  ;;  %3870 = vmatmul.mubr.msk.f32.gmra.mxu1 %vm287_vm0, %v64_v41 }
  0xbf   :  { %3481 = vmatprep.mubr.msk.f32.mxu0 %vm4145_vm1, %v4144_v2  ;;  %3872 = vmatprep.mubr.msk.f32.mxu1 %vm4145_vm1, %v4144_v2 }
  0xc2   :  { %3482 = vmatmul.mubr.msk.f32.gmra.mxu0 %vm287_vm0, %v198_v42  ;;  %3873 = vmatmul.mubr.msk.f32.gmra.mxu1 %vm287_vm0, %v65_v43 }
  0xc3   :  { %3484 = vmatprep.mubr.msk.f32.mxu0 %vm4145_vm1, %v4144_v2  ;;  %3875 = vmatprep.mubr.msk.f32.mxu1 %vm4145_vm1, %v4144_v2 }
  0xc6   :  { %3485 = vmatmul.mubr.msk.f32.gmra.mxu0 %vm287_vm0, %v199_v44  ;;  %3876 = vmatmul.mubr.msk.f32.gmra.mxu1 %vm287_vm0, %v66_v45 }
  0xc7   :  { %3487 = vmatprep.mubr.msk.f32.mxu0 %vm4145_vm1, %v4144_v2  ;;  %3878 = vmatprep.mubr.msk.f32.mxu1 %vm4145_vm1, %v4144_v2 }
  0xca   :  { %3488 = vmatmul.mubr.msk.f32.gmra.mxu0 %vm287_vm0, %v200_v46  ;;  %3879 = vmatmul.mubr.msk.f32.gmra.mxu1 %vm287_vm0, %v67_v47  ;;  %v209_v47 = vld [vmem:[%s5887_s1 + $0x1b8] sm:$0xff] }
  0xcb   :  { %3490 = vmatprep.mubr.msk.f32.mxu0 %vm4145_vm1, %v4144_v2  ;;  %3881 = vmatprep.mubr.msk.f32.mxu1 %vm4145_vm1, %v4144_v2 }
  0xce   :  { %3491 = vmatmul.mubr.msk.f32.gmra.mxu0 %vm287_vm0, %v201_v48  ;;  %3882 = vmatmul.mubr.msk.f32.gmra.mxu1 %vm287_vm0, %v68_v49  ;;  %v76_v48 = vld [vmem:[%s5886_s0 + $0x1b8] sm:$0xff] }
  0xcf   :  { %3493 = vmatprep.mubr.msk.f32.mxu0 %vm4145_vm1, %v4144_v2  ;;  %3884 = vmatprep.mubr.msk.f32.mxu1 %vm4145_vm1, %v4144_v2 }
  0xd2   :  { %v729_v52 = vpop.f32.mrf.mxu0  ;;  %3494 = vmatmul.mubr.msk.f32.gmra.mxu0 %vm287_vm0, %v202_v50  ;;  %v1794_v53 = vpop.f32.mrf.mxu1  ;;  %3885 = vmatmul.mubr.msk.f32.gmra.mxu1 %vm287_vm0, %v69_v51 }
  0xd3   :  { %v1795_v55 = vadd.f32 %v1794_v53, %v729_v52  ;;  %3496 = vmatprep.mubr.msk.f32.mxu0 %vm4145_vm1, %v4144_v2  ;;  %3887 = vmatprep.mubr.msk.f32.mxu1 %vm4145_vm1, %v4144_v2 }
  0xd4   :  { %v3351_v58 = vpop.f32.mrf.mxu0  ;;  %v3742_v59 = vpop.f32.mrf.mxu1 }
  0xd5   :  { %v2425_v60 = vadd.f32 %v4833_v54, %v1795_v55  ;;  %v77_v58 = vld [vmem:[%s5886_s0 + $0x1c0] sm:$0xff] }
  0xd6   :  { %v734_v61 = vpop.f32.mrf.mxu0  ;;  %3497 = vmatmul.mubr.msk.f32.gmra.mxu0 %vm287_vm0, %v203_v56  ;;  %v1799_v62 = vpop.f32.mrf.mxu1  ;;  %3888 = vmatmul.mubr.msk.f32.gmra.mxu1 %vm287_vm0, %v70_v57  ;;  %v210_v57 = vld [vmem:[%s5887_s1 + $0x1c0] sm:$0xff] }
  0xd7   :  { %v2550_v63 = vmax.f32 %v2425_v60, 0.0  ;;  %v1800_v0 = vadd.f32 %v1799_v62, %v734_v61  ;;  %3499 = vmatprep.mubr.msk.f32.mxu0 %vm4145_vm1, %v4144_v2  ;;  %3890 = vmatprep.mubr.msk.f32.mxu1 %vm4145_vm1, %v4144_v2 }
  0xd8   :  { %v3354_v4 = vpop.f32.mrf.mxu0  ;;  %v3745_v5 = vpop.f32.mrf.mxu1 }
  0xd9   :  { %2675 = vst [vmem:[#allocation2] sm:$0xff] %v2550_v63  ;;  %v2426_v6 = vadd.f32 %v4833_v54, %v1800_v0  ;;  %v78_v4 = vld [vmem:[%s5886_s0 + $0x1c8] sm:$0xff] }
  0xda   :  { %v739_v7 = vpop.f32.mrf.mxu0  ;;  %3500 = vmatmul.mubr.msk.f32.gmra.mxu0 %vm287_vm0, %v204_v1  ;;  %v1804_v8 = vpop.f32.mrf.mxu1  ;;  %3891 = vmatmul.mubr.msk.f32.gmra.mxu1 %vm287_vm0, %v71_v3  ;;  %v211_v3 = vld [vmem:[%s5887_s1 + $0x1c8] sm:$0xff] }
  0xdb   :  { %v2551_v9 = vmax.f32 %v2426_v6, 0.0  ;;  %v1805_v10 = vadd.f32 %v1804_v8, %v739_v7  ;;  %3502 = vmatprep.mubr.msk.f32.mxu0 %vm4145_vm1, %v4144_v2  ;;  %3893 = vmatprep.mubr.msk.f32.mxu1 %vm4145_vm1, %v4144_v2 }
  0xdc   :  { %v3357_v13 = vpop.f32.mrf.mxu0  ;;  %v3748_v14 = vpop.f32.mrf.mxu1 }
  0xdd   :  { %2676 = vst [vmem:[#allocation2 + $0x8] sm:$0xff] %v2551_v9  ;;  %v2427_v15 = vadd.f32 %v4833_v54, %v1805_v10  ;;  %v79_v13 = vld [vmem:[%s5886_s0 + $0x1d0] sm:$0xff] }
  0xde   :  { %v744_v16 = vpop.f32.mrf.mxu0  ;;  %3503 = vmatmul.mubr.msk.f32.gmra.mxu0 %vm287_vm0, %v205_v11  ;;  %v1809_v17 = vpop.f32.mrf.mxu1  ;;  %3894 = vmatmul.mubr.msk.f32.gmra.mxu1 %vm287_vm0, %v72_v12  ;;  %v212_v12 = vld [vmem:[%s5887_s1 + $0x1d0] sm:$0xff] }
  0xdf   :  { %v2552_v18 = vmax.f32 %v2427_v15, 0.0  ;;  %v1810_v19 = vadd.f32 %v1809_v17, %v744_v16  ;;  %3505 = vmatprep.mubr.msk.f32.mxu0 %vm4145_vm1, %v4144_v2  ;;  %3896 = vmatprep.mubr.msk.f32.mxu1 %vm4145_vm1, %v4144_v2 }
  0xe0   :  { %v3360_v22 = vpop.f32.mrf.mxu0  ;;  %v3751_v23 = vpop.f32.mrf.mxu1 }
  0xe1   :  { %2677 = vst [vmem:[#allocation2 + $0x10] sm:$0xff] %v2552_v18  ;;  %v2428_v24 = vadd.f32 %v4833_v54, %v1810_v19  ;;  %v80_v22 = vld [vmem:[%s5886_s0 + $0x1d8] sm:$0xff] }
  0xe2   :  { %v749_v25 = vpop.f32.mrf.mxu0  ;;  %3506 = vmatmul.mubr.msk.f32.gmra.mxu0 %vm287_vm0, %v206_v20  ;;  %v1814_v26 = vpop.f32.mrf.mxu1  ;;  %3897 = vmatmul.mubr.msk.f32.gmra.mxu1 %vm287_vm0, %v73_v21  ;;  %v213_v21 = vld [vmem:[%s5887_s1 + $0x1d8] sm:$0xff] }
  0xe3   :  { %v2553_v27 = vmax.f32 %v2428_v24, 0.0  ;;  %v1815_v28 = vadd.f32 %v1814_v26, %v749_v25  ;;  %3508 = vmatprep.mubr.msk.f32.mxu0 %vm4145_vm1, %v4144_v2  ;;  %3899 = vmatprep.mubr.msk.f32.mxu1 %vm4145_vm1, %v4144_v2 }
  0xe4   :  { %v3363_v31 = vpop.f32.mrf.mxu0  ;;  %v3754_v32 = vpop.f32.mrf.mxu1 }
  0xe5   :  { %2678 = vst [vmem:[#allocation2 + $0x18] sm:$0xff] %v2553_v27  ;;  %v2429_v33 = vadd.f32 %v4833_v54, %v1815_v28  ;;  %v81_v31 = vld [vmem:[%s5886_s0 + $0x1e0] sm:$0xff] }
  0xe6   :  { %v754_v34 = vpop.f32.mrf.mxu0  ;;  %3509 = vmatmul.mubr.msk.f32.gmra.mxu0 %vm287_vm0, %v207_v29  ;;  %v1819_v35 = vpop.f32.mrf.mxu1  ;;  %3900 = vmatmul.mubr.msk.f32.gmra.mxu1 %vm287_vm0, %v74_v30  ;;  %v214_v30 = vld [vmem:[%s5887_s1 + $0x1e0] sm:$0xff] }
  0xe7   :  { %v2554_v36 = vmax.f32 %v2429_v33, 0.0  ;;  %v1820_v37 = vadd.f32 %v1819_v35, %v754_v34  ;;  %3511 = vmatprep.mubr.msk.f32.mxu0 %vm4145_vm1, %v4144_v2  ;;  %3902 = vmatprep.mubr.msk.f32.mxu1 %vm4145_vm1, %v4144_v2 }
  0xe8   :  { %v3366_v40 = vpop.f32.mrf.mxu0  ;;  %v3757_v41 = vpop.f32.mrf.mxu1 }
  0xe9   :  { %2679 = vst [vmem:[#allocation2 + $0x20] sm:$0xff] %v2554_v36  ;;  %v2430_v42 = vadd.f32 %v4833_v54, %v1820_v37  ;;  %v82_v40 = vld [vmem:[%s5886_s0 + $0x1e8] sm:$0xff] }
  0xea   :  { %v759_v43 = vpop.f32.mrf.mxu0  ;;  %3512 = vmatmul.mubr.msk.f32.gmra.mxu0 %vm287_vm0, %v208_v38  ;;  %v1824_v44 = vpop.f32.mrf.mxu1  ;;  %3903 = vmatmul.mubr.msk.f32.gmra.mxu1 %vm287_vm0, %v75_v39  ;;  %v215_v39 = vld [vmem:[%s5887_s1 + $0x1e8] sm:$0xff] }
  0xeb   :  { %v2555_v45 = vmax.f32 %v2430_v42, 0.0  ;;  %v1825_v46 = vadd.f32 %v1824_v44, %v759_v43  ;;  %3514 = vmatprep.mubr.msk.f32.mxu0 %vm4145_vm1, %v4144_v2  ;;  %3905 = vmatprep.mubr.msk.f32.mxu1 %vm4145_vm1, %v4144_v2 }
  0xec   :  { %v3369_v49 = vpop.f32.mrf.mxu0  ;;  %v3760_v50 = vpop.f32.mrf.mxu1 }
  0xed   :  { %2680 = vst [vmem:[#allocation2 + $0x28] sm:$0xff] %v2555_v45  ;;  %v2431_v51 = vadd.f32 %v4833_v54, %v1825_v46  ;;  %v83_v49 = vld [vmem:[%s5886_s0 + $0x1f0] sm:$0xff] }
  0xee   :  { %v764_v52 = vpop.f32.mrf.mxu0  ;;  %3515 = vmatmul.mubr.msk.f32.gmra.mxu0 %vm287_vm0, %v209_v47  ;;  %v1829_v53 = vpop.f32.mrf.mxu1  ;;  %3906 = vmatmul.mubr.msk.f32.gmra.mxu1 %vm287_vm0, %v76_v48  ;;  %v216_v48 = vld [vmem:[%s5887_s1 + $0x1f0] sm:$0xff] }
  0xef   :  { %v2556_v55 = vmax.f32 %v2431_v51, 0.0  ;;  %v1830_v56 = vadd.f32 %v1829_v53, %v764_v52  ;;  %3517 = vmatprep.mubr.msk.f32.mxu0 %vm4145_vm1, %v4144_v2  ;;  %3908 = vmatprep.mubr.msk.f32.mxu1 %vm4145_vm1, %v4144_v2 }
  0xf0   :  { %v3372_v59 = vpop.f32.mrf.mxu0  ;;  %v3763_v60 = vpop.f32.mrf.mxu1 }
  0xf1   :  { %2681 = vst [vmem:[#allocation2 + $0x30] sm:$0xff] %v2556_v55  ;;  %v2432_v61 = vadd.f32 %v4833_v54, %v1830_v56  ;;  %v84_v59 = vld [vmem:[%s5886_s0 + $0x1f8] sm:$0xff] }
  0xf2   :  { %v769_v62 = vpop.f32.mrf.mxu0  ;;  %3518 = vmatmul.mubr.msk.f32.gmra.mxu0 %vm287_vm0, %v210_v57  ;;  %v1834_v63 = vpop.f32.mrf.mxu1  ;;  %3909 = vmatmul.mubr.msk.f32.gmra.mxu1 %vm287_vm0, %v77_v58  ;;  %v217_v58 = vld [vmem:[%s5887_s1 + $0x1f8] sm:$0xff] }
  0xf3   :  { %v2557_v0 = vmax.f32 %v2432_v61, 0.0  ;;  %v1835_v1 = vadd.f32 %v1834_v63, %v769_v62  ;;  %3520 = vmatprep.mubr.msk.f32.mxu0 %vm4145_vm1, %v4144_v2  ;;  %3911 = vmatprep.mubr.msk.f32.mxu1 %vm4145_vm1, %v4144_v2 }
  0xf4   :  { %v3375_v5 = vpop.f32.mrf.mxu0  ;;  %v3766_v6 = vpop.f32.mrf.mxu1 }
  0xf5   :  { %2682 = vst [vmem:[#allocation2 + $0x38] sm:$0xff] %v2557_v0  ;;  %v2433_v7 = vadd.f32 %v4833_v54, %v1835_v1  ;;  %v85_v5 = vld [vmem:[%s5886_s0 + $0x200] sm:$0xff] }
  0xf6   :  { %v774_v8 = vpop.f32.mrf.mxu0  ;;  %3521 = vmatmul.mubr.msk.f32.gmra.mxu0 %vm287_vm0, %v211_v3  ;;  %v1839_v9 = vpop.f32.mrf.mxu1  ;;  %3912 = vmatmul.mubr.msk.f32.gmra.mxu1 %vm287_vm0, %v78_v4  ;;  %v218_v4 = vld [vmem:[%s5887_s1 + $0x200] sm:$0xff] }
  0xf7   :  { %v2558_v10 = vmax.f32 %v2433_v7, 0.0  ;;  %v1840_v11 = vadd.f32 %v1839_v9, %v774_v8  ;;  %3523 = vmatprep.mubr.msk.f32.mxu0 %vm4145_vm1, %v4144_v2  ;;  %3914 = vmatprep.mubr.msk.f32.mxu1 %vm4145_vm1, %v4144_v2 }
  0xf8   :  { %v3378_v14 = vpop.f32.mrf.mxu0  ;;  %v3769_v15 = vpop.f32.mrf.mxu1 }
  0xf9   :  { %2683 = vst [vmem:[#allocation2 + $0x40] sm:$0xff] %v2558_v10  ;;  %v2434_v16 = vadd.f32 %v4833_v54, %v1840_v11  ;;  %v86_v14 = vld [vmem:[%s5886_s0 + $0x208] sm:$0xff] }
  0xfa   :  { %v779_v17 = vpop.f32.mrf.mxu0  ;;  %3524 = vmatmul.mubr.msk.f32.gmra.mxu0 %vm287_vm0, %v212_v12  ;;  %v1844_v18 = vpop.f32.mrf.mxu1  ;;  %3915 = vmatmul.mubr.msk.f32.gmra.mxu1 %vm287_vm0, %v79_v13  ;;  %v219_v13 = vld [vmem:[%s5887_s1 + $0x208] sm:$0xff] }
  0xfb   :  { %v2559_v19 = vmax.f32 %v2434_v16, 0.0  ;;  %v1845_v20 = vadd.f32 %v1844_v18, %v779_v17  ;;  %3526 = vmatprep.mubr.msk.f32.mxu0 %vm4145_vm1, %v4144_v2  ;;  %3917 = vmatprep.mubr.msk.f32.mxu1 %vm4145_vm1, %v4144_v2 }
  0xfc   :  { %v3381_v23 = vpop.f32.mrf.mxu0  ;;  %v3772_v24 = vpop.f32.mrf.mxu1 }
  0xfd   :  { %2684 = vst [vmem:[#allocation2 + $0x48] sm:$0xff] %v2559_v19  ;;  %v2435_v25 = vadd.f32 %v4833_v54, %v1845_v20  ;;  %v87_v23 = vld [vmem:[%s5886_s0 + $0x210] sm:$0xff] }
  0xfe   :  { %v784_v26 = vpop.f32.mrf.mxu0  ;;  %3527 = vmatmul.mubr.msk.f32.gmra.mxu0 %vm287_vm0, %v213_v21  ;;  %v1849_v27 = vpop.f32.mrf.mxu1  ;;  %3918 = vmatmul.mubr.msk.f32.gmra.mxu1 %vm287_vm0, %v80_v22  ;;  %v220_v22 = vld [vmem:[%s5887_s1 + $0x210] sm:$0xff] }
  0xff   :  { %v2560_v28 = vmax.f32 %v2435_v25, 0.0  ;;  %v1850_v29 = vadd.f32 %v1849_v27, %v784_v26  ;;  %3529 = vmatprep.mubr.msk.f32.mxu0 %vm4145_vm1, %v4144_v2  ;;  %3920 = vmatprep.mubr.msk.f32.mxu1 %vm4145_vm1, %v4144_v2 }
 0x100   :  { %v3384_v32 = vpop.f32.mrf.mxu0  ;;  %v3775_v33 = vpop.f32.mrf.mxu1 }
 0x101   :  { %2685 = vst [vmem:[#allocation2 + $0x50] sm:$0xff] %v2560_v28  ;;  %v2436_v34 = vadd.f32 %v4833_v54, %v1850_v29  ;;  %v88_v32 = vld [vmem:[%s5886_s0 + $0x218] sm:$0xff] }
 0x102   :  { %v789_v35 = vpop.f32.mrf.mxu0  ;;  %3530 = vmatmul.mubr.msk.f32.gmra.mxu0 %vm287_vm0, %v214_v30  ;;  %v1854_v36 = vpop.f32.mrf.mxu1  ;;  %3921 = vmatmul.mubr.msk.f32.gmra.mxu1 %vm287_vm0, %v81_v31  ;;  %v221_v31 = vld [vmem:[%s5887_s1 + $0x218] sm:$0xff] }
 0x103   :  { %v2561_v37 = vmax.f32 %v2436_v34, 0.0  ;;  %v1855_v38 = vadd.f32 %v1854_v36, %v789_v35  ;;  %3532 = vmatprep.mubr.msk.f32.mxu0 %vm4145_vm1, %v4144_v2  ;;  %3923 = vmatprep.mubr.msk.f32.mxu1 %vm4145_vm1, %v4144_v2 }
 0x104   :  { %v3387_v41 = vpop.f32.mrf.mxu0  ;;  %v3778_v42 = vpop.f32.mrf.mxu1 }
 0x105   :  { %2686 = vst [vmem:[#allocation2 + $0x58] sm:$0xff] %v2561_v37  ;;  %v2437_v43 = vadd.f32 %v4833_v54, %v1855_v38  ;;  %v89_v41 = vld [vmem:[%s5886_s0 + $0x220] sm:$0xff] }
 0x106   :  { %v794_v44 = vpop.f32.mrf.mxu0  ;;  %3533 = vmatmul.mubr.msk.f32.gmra.mxu0 %vm287_vm0, %v215_v39  ;;  %v1859_v45 = vpop.f32.mrf.mxu1  ;;  %3924 = vmatmul.mubr.msk.f32.gmra.mxu1 %vm287_vm0, %v82_v40  ;;  %v222_v40 = vld [vmem:[%s5887_s1 + $0x220] sm:$0xff] }
 0x107   :  { %v2562_v46 = vmax.f32 %v2437_v43, 0.0  ;;  %v1860_v47 = vadd.f32 %v1859_v45, %v794_v44  ;;  %3535 = vmatprep.mubr.msk.f32.mxu0 %vm4145_vm1, %v4144_v2  ;;  %3926 = vmatprep.mubr.msk.f32.mxu1 %vm4145_vm1, %v4144_v2 }
 0x108   :  { %v3390_v50 = vpop.f32.mrf.mxu0  ;;  %v3781_v51 = vpop.f32.mrf.mxu1 }
 0x109   :  { %2687 = vst [vmem:[#allocation2 + $0x60] sm:$0xff] %v2562_v46  ;;  %v2438_v52 = vadd.f32 %v4833_v54, %v1860_v47  ;;  %v90_v50 = vld [vmem:[%s5886_s0 + $0x228] sm:$0xff] }
 0x10a   :  { %v799_v53 = vpop.f32.mrf.mxu0  ;;  %3536 = vmatmul.mubr.msk.f32.gmra.mxu0 %vm287_vm0, %v216_v48  ;;  %v1864_v55 = vpop.f32.mrf.mxu1  ;;  %3927 = vmatmul.mubr.msk.f32.gmra.mxu1 %vm287_vm0, %v83_v49  ;;  %v223_v49 = vld [vmem:[%s5887_s1 + $0x228] sm:$0xff] }
 0x10b   :  { %v2563_v56 = vmax.f32 %v2438_v52, 0.0  ;;  %v1865_v57 = vadd.f32 %v1864_v55, %v799_v53  ;;  %3538 = vmatprep.mubr.msk.f32.mxu0 %vm4145_vm1, %v4144_v2  ;;  %3929 = vmatprep.mubr.msk.f32.mxu1 %vm4145_vm1, %v4144_v2 }
 0x10c   :  { %v3393_v60 = vpop.f32.mrf.mxu0  ;;  %v3784_v61 = vpop.f32.mrf.mxu1 }
 0x10d   :  { %2688 = vst [vmem:[#allocation2 + $0x68] sm:$0xff] %v2563_v56  ;;  %v2439_v62 = vadd.f32 %v4833_v54, %v1865_v57  ;;  %v91_v60 = vld [vmem:[%s5886_s0 + $0x230] sm:$0xff] }
 0x10e   :  { %v804_v63 = vpop.f32.mrf.mxu0  ;;  %3539 = vmatmul.mubr.msk.f32.gmra.mxu0 %vm287_vm0, %v217_v58  ;;  %v1869_v0 = vpop.f32.mrf.mxu1  ;;  %3930 = vmatmul.mubr.msk.f32.gmra.mxu1 %vm287_vm0, %v84_v59  ;;  %v224_v59 = vld [vmem:[%s5887_s1 + $0x230] sm:$0xff] }
 0x10f   :  { %v2564_v1 = vmax.f32 %v2439_v62, 0.0  ;;  %v1870_v3 = vadd.f32 %v1869_v0, %v804_v63  ;;  %3541 = vmatprep.mubr.msk.f32.mxu0 %vm4145_vm1, %v4144_v2  ;;  %3932 = vmatprep.mubr.msk.f32.mxu1 %vm4145_vm1, %v4144_v2 }
 0x110   :  { %v3396_v6 = vpop.f32.mrf.mxu0  ;;  %v3787_v7 = vpop.f32.mrf.mxu1 }
 0x111   :  { %2689 = vst [vmem:[#allocation2 + $0x70] sm:$0xff] %v2564_v1  ;;  %v2440_v8 = vadd.f32 %v4833_v54, %v1870_v3  ;;  %v92_v6 = vld [vmem:[%s5886_s0 + $0x238] sm:$0xff] }
 0x112   :  { %v809_v9 = vpop.f32.mrf.mxu0  ;;  %3542 = vmatmul.mubr.msk.f32.gmra.mxu0 %vm287_vm0, %v218_v4  ;;  %v1874_v10 = vpop.f32.mrf.mxu1  ;;  %3933 = vmatmul.mubr.msk.f32.gmra.mxu1 %vm287_vm0, %v85_v5  ;;  %v225_v5 = vld [vmem:[%s5887_s1 + $0x238] sm:$0xff] }
 0x113   :  { %v2565_v11 = vmax.f32 %v2440_v8, 0.0  ;;  %v1875_v12 = vadd.f32 %v1874_v10, %v809_v9  ;;  %3544 = vmatprep.mubr.msk.f32.mxu0 %vm4145_vm1, %v4144_v2  ;;  %3935 = vmatprep.mubr.msk.f32.mxu1 %vm4145_vm1, %v4144_v2 }
 0x114   :  { %v3399_v15 = vpop.f32.mrf.mxu0  ;;  %v3790_v16 = vpop.f32.mrf.mxu1 }
 0x115   :  { %2690 = vst [vmem:[#allocation2 + $0x78] sm:$0xff] %v2565_v11  ;;  %v2441_v17 = vadd.f32 %v4833_v54, %v1875_v12  ;;  %v93_v15 = vld [vmem:[%s5886_s0 + $0x240] sm:$0xff] }
 0x116   :  { %v814_v18 = vpop.f32.mrf.mxu0  ;;  %3545 = vmatmul.mubr.msk.f32.gmra.mxu0 %vm287_vm0, %v219_v13  ;;  %v1879_v19 = vpop.f32.mrf.mxu1  ;;  %3936 = vmatmul.mubr.msk.f32.gmra.mxu1 %vm287_vm0, %v86_v14  ;;  %v226_v14 = vld [vmem:[%s5887_s1 + $0x240] sm:$0xff] }
 0x117   :  { %v2566_v20 = vmax.f32 %v2441_v17, 0.0  ;;  %v1880_v21 = vadd.f32 %v1879_v19, %v814_v18  ;;  %3547 = vmatprep.mubr.msk.f32.mxu0 %vm4145_vm1, %v4144_v2  ;;  %3938 = vmatprep.mubr.msk.f32.mxu1 %vm4145_vm1, %v4144_v2 }
 0x118   :  { %v3402_v24 = vpop.f32.mrf.mxu0  ;;  %v3793_v25 = vpop.f32.mrf.mxu1 }
 0x119   :  { %2691 = vst [vmem:[#allocation2 + $0x80] sm:$0xff] %v2566_v20  ;;  %v2442_v26 = vadd.f32 %v4833_v54, %v1880_v21  ;;  %v94_v24 = vld [vmem:[%s5886_s0 + $0x248] sm:$0xff] }
 0x11a   :  { %v819_v27 = vpop.f32.mrf.mxu0  ;;  %3548 = vmatmul.mubr.msk.f32.gmra.mxu0 %vm287_vm0, %v220_v22  ;;  %v1884_v28 = vpop.f32.mrf.mxu1  ;;  %3939 = vmatmul.mubr.msk.f32.gmra.mxu1 %vm287_vm0, %v87_v23  ;;  %v227_v23 = vld [vmem:[%s5887_s1 + $0x248] sm:$0xff] }
 0x11b   :  { %v2567_v29 = vmax.f32 %v2442_v26, 0.0  ;;  %v1885_v30 = vadd.f32 %v1884_v28, %v819_v27  ;;  %3550 = vmatprep.mubr.msk.f32.mxu0 %vm4145_vm1, %v4144_v2  ;;  %3941 = vmatprep.mubr.msk.f32.mxu1 %vm4145_vm1, %v4144_v2 }
 0x11c   :  { %v3405_v33 = vpop.f32.mrf.mxu0  ;;  %v3796_v34 = vpop.f32.mrf.mxu1 }
 0x11d   :  { %2692 = vst [vmem:[#allocation2 + $0x88] sm:$0xff] %v2567_v29  ;;  %v2443_v35 = vadd.f32 %v4833_v54, %v1885_v30  ;;  %v95_v33 = vld [vmem:[%s5886_s0 + $0x250] sm:$0xff] }
 0x11e   :  { %v824_v36 = vpop.f32.mrf.mxu0  ;;  %3551 = vmatmul.mubr.msk.f32.gmra.mxu0 %vm287_vm0, %v221_v31  ;;  %v1889_v37 = vpop.f32.mrf.mxu1  ;;  %3942 = vmatmul.mubr.msk.f32.gmra.mxu1 %vm287_vm0, %v88_v32  ;;  %v228_v32 = vld [vmem:[%s5887_s1 + $0x250] sm:$0xff] }
 0x11f   :  { %v2568_v38 = vmax.f32 %v2443_v35, 0.0  ;;  %v1890_v39 = vadd.f32 %v1889_v37, %v824_v36  ;;  %3553 = vmatprep.mubr.msk.f32.mxu0 %vm4145_vm1, %v4144_v2  ;;  %3944 = vmatprep.mubr.msk.f32.mxu1 %vm4145_vm1, %v4144_v2 }
 0x120   :  { %v3408_v42 = vpop.f32.mrf.mxu0  ;;  %v3799_v43 = vpop.f32.mrf.mxu1 }
 0x121   :  { %2693 = vst [vmem:[#allocation2 + $0x90] sm:$0xff] %v2568_v38  ;;  %v2444_v44 = vadd.f32 %v4833_v54, %v1890_v39  ;;  %v96_v42 = vld [vmem:[%s5886_s0 + $0x258] sm:$0xff] }
 0x122   :  { %v829_v45 = vpop.f32.mrf.mxu0  ;;  %3554 = vmatmul.mubr.msk.f32.gmra.mxu0 %vm287_vm0, %v222_v40  ;;  %v1894_v46 = vpop.f32.mrf.mxu1  ;;  %3945 = vmatmul.mubr.msk.f32.gmra.mxu1 %vm287_vm0, %v89_v41  ;;  %v229_v41 = vld [vmem:[%s5887_s1 + $0x258] sm:$0xff] }
 0x123   :  { %v2569_v47 = vmax.f32 %v2444_v44, 0.0  ;;  %v1895_v48 = vadd.f32 %v1894_v46, %v829_v45  ;;  %3556 = vmatprep.mubr.msk.f32.mxu0 %vm4145_vm1, %v4144_v2  ;;  %3947 = vmatprep.mubr.msk.f32.mxu1 %vm4145_vm1, %v4144_v2 }
 0x124   :  { %v3411_v51 = vpop.f32.mrf.mxu0  ;;  %v3802_v52 = vpop.f32.mrf.mxu1 }
 0x125   :  { %2694 = vst [vmem:[#allocation2 + $0x98] sm:$0xff] %v2569_v47  ;;  %v2445_v53 = vadd.f32 %v4833_v54, %v1895_v48  ;;  %v97_v51 = vld [vmem:[%s5886_s0 + $0x260] sm:$0xff] }
 0x126   :  { %v834_v55 = vpop.f32.mrf.mxu0  ;;  %3557 = vmatmul.mubr.msk.f32.gmra.mxu0 %vm287_vm0, %v223_v49  ;;  %v1899_v56 = vpop.f32.mrf.mxu1  ;;  %3948 = vmatmul.mubr.msk.f32.gmra.mxu1 %vm287_vm0, %v90_v50  ;;  %v230_v50 = vld [vmem:[%s5887_s1 + $0x260] sm:$0xff] }
 0x127   :  { %v2570_v57 = vmax.f32 %v2445_v53, 0.0  ;;  %v1900_v58 = vadd.f32 %v1899_v56, %v834_v55  ;;  %3559 = vmatprep.mubr.msk.f32.mxu0 %vm4145_vm1, %v4144_v2  ;;  %3950 = vmatprep.mubr.msk.f32.mxu1 %vm4145_vm1, %v4144_v2 }
 0x128   :  { %v3414_v61 = vpop.f32.mrf.mxu0  ;;  %v3805_v62 = vpop.f32.mrf.mxu1 }
 0x129   :  { %2695 = vst [vmem:[#allocation2 + $0xa0] sm:$0xff] %v2570_v57  ;;  %v2446_v63 = vadd.f32 %v4833_v54, %v1900_v58  ;;  %v98_v61 = vld [vmem:[%s5886_s0 + $0x268] sm:$0xff] }
 0x12a   :  { %v839_v0 = vpop.f32.mrf.mxu0  ;;  %3560 = vmatmul.mubr.msk.f32.gmra.mxu0 %vm287_vm0, %v224_v59  ;;  %v1904_v1 = vpop.f32.mrf.mxu1  ;;  %3951 = vmatmul.mubr.msk.f32.gmra.mxu1 %vm287_vm0, %v91_v60  ;;  %v231_v60 = vld [vmem:[%s5887_s1 + $0x268] sm:$0xff] }
 0x12b   :  { %v2571_v3 = vmax.f32 %v2446_v63, 0.0  ;;  %v1905_v4 = vadd.f32 %v1904_v1, %v839_v0  ;;  %3562 = vmatprep.mubr.msk.f32.mxu0 %vm4145_vm1, %v4144_v2  ;;  %3953 = vmatprep.mubr.msk.f32.mxu1 %vm4145_vm1, %v4144_v2 }
 0x12c   :  { %v3417_v7 = vpop.f32.mrf.mxu0  ;;  %v3808_v8 = vpop.f32.mrf.mxu1 }
 0x12d   :  { %2696 = vst [vmem:[#allocation2 + $0xa8] sm:$0xff] %v2571_v3  ;;  %v2447_v9 = vadd.f32 %v4833_v54, %v1905_v4  ;;  %v99_v7 = vld [vmem:[%s5886_s0 + $0x270] sm:$0xff] }
 0x12e   :  { %v844_v10 = vpop.f32.mrf.mxu0  ;;  %3563 = vmatmul.mubr.msk.f32.gmra.mxu0 %vm287_vm0, %v225_v5  ;;  %v1909_v11 = vpop.f32.mrf.mxu1  ;;  %3954 = vmatmul.mubr.msk.f32.gmra.mxu1 %vm287_vm0, %v92_v6  ;;  %v232_v6 = vld [vmem:[%s5887_s1 + $0x270] sm:$0xff] }
 0x12f   :  { %v2572_v12 = vmax.f32 %v2447_v9, 0.0  ;;  %v1910_v13 = vadd.f32 %v1909_v11, %v844_v10  ;;  %3565 = vmatprep.mubr.msk.f32.mxu0 %vm4145_vm1, %v4144_v2  ;;  %3956 = vmatprep.mubr.msk.f32.mxu1 %vm4145_vm1, %v4144_v2 }
 0x130   :  { %v3420_v16 = vpop.f32.mrf.mxu0  ;;  %v3811_v17 = vpop.f32.mrf.mxu1 }
 0x131   :  { %2697 = vst [vmem:[#allocation2 + $0xb0] sm:$0xff] %v2572_v12  ;;  %v2448_v18 = vadd.f32 %v4833_v54, %v1910_v13  ;;  %v100_v16 = vld [vmem:[%s5886_s0 + $0x278] sm:$0xff] }
 0x132   :  { %v849_v19 = vpop.f32.mrf.mxu0  ;;  %3566 = vmatmul.mubr.msk.f32.gmra.mxu0 %vm287_vm0, %v226_v14  ;;  %v1914_v20 = vpop.f32.mrf.mxu1  ;;  %3957 = vmatmul.mubr.msk.f32.gmra.mxu1 %vm287_vm0, %v93_v15  ;;  %v233_v15 = vld [vmem:[%s5887_s1 + $0x278] sm:$0xff] }
 0x133   :  { %v2573_v21 = vmax.f32 %v2448_v18, 0.0  ;;  %v1915_v22 = vadd.f32 %v1914_v20, %v849_v19  ;;  %3568 = vmatprep.mubr.msk.f32.mxu0 %vm4145_vm1, %v4144_v2  ;;  %3959 = vmatprep.mubr.msk.f32.mxu1 %vm4145_vm1, %v4144_v2 }
 0x134   :  { %v3423_v25 = vpop.f32.mrf.mxu0  ;;  %v3814_v26 = vpop.f32.mrf.mxu1 }
 0x135   :  { %2698 = vst [vmem:[#allocation2 + $0xb8] sm:$0xff] %v2573_v21  ;;  %v2449_v27 = vadd.f32 %v4833_v54, %v1915_v22  ;;  %v101_v25 = vld [vmem:[%s5886_s0 + $0x280] sm:$0xff] }
 0x136   :  { %v854_v28 = vpop.f32.mrf.mxu0  ;;  %3569 = vmatmul.mubr.msk.f32.gmra.mxu0 %vm287_vm0, %v227_v23  ;;  %v1919_v29 = vpop.f32.mrf.mxu1  ;;  %3960 = vmatmul.mubr.msk.f32.gmra.mxu1 %vm287_vm0, %v94_v24  ;;  %v234_v24 = vld [vmem:[%s5887_s1 + $0x280] sm:$0xff] }
 0x137   :  { %v2574_v30 = vmax.f32 %v2449_v27, 0.0  ;;  %v1920_v31 = vadd.f32 %v1919_v29, %v854_v28  ;;  %3571 = vmatprep.mubr.msk.f32.mxu0 %vm4145_vm1, %v4144_v2  ;;  %3962 = vmatprep.mubr.msk.f32.mxu1 %vm4145_vm1, %v4144_v2 }
 0x138   :  { %v3426_v34 = vpop.f32.mrf.mxu0  ;;  %v3817_v35 = vpop.f32.mrf.mxu1 }
 0x139   :  { %2699 = vst [vmem:[#allocation2 + $0xc0] sm:$0xff] %v2574_v30  ;;  %v2450_v36 = vadd.f32 %v4833_v54, %v1920_v31  ;;  %v102_v34 = vld [vmem:[%s5886_s0 + $0x288] sm:$0xff] }
 0x13a   :  { %v859_v37 = vpop.f32.mrf.mxu0  ;;  %3572 = vmatmul.mubr.msk.f32.gmra.mxu0 %vm287_vm0, %v228_v32  ;;  %v1924_v38 = vpop.f32.mrf.mxu1  ;;  %3963 = vmatmul.mubr.msk.f32.gmra.mxu1 %vm287_vm0, %v95_v33  ;;  %v235_v33 = vld [vmem:[%s5887_s1 + $0x288] sm:$0xff] }
 0x13b   :  { %v2575_v39 = vmax.f32 %v2450_v36, 0.0  ;;  %v1925_v40 = vadd.f32 %v1924_v38, %v859_v37  ;;  %3574 = vmatprep.mubr.msk.f32.mxu0 %vm4145_vm1, %v4144_v2  ;;  %3965 = vmatprep.mubr.msk.f32.mxu1 %vm4145_vm1, %v4144_v2 }
 0x13c   :  { %v3429_v43 = vpop.f32.mrf.mxu0  ;;  %v3820_v44 = vpop.f32.mrf.mxu1 }
 0x13d   :  { %2700 = vst [vmem:[#allocation2 + $0xc8] sm:$0xff] %v2575_v39  ;;  %v2451_v45 = vadd.f32 %v4833_v54, %v1925_v40  ;;  %v103_v43 = vld [vmem:[%s5886_s0 + $0x290] sm:$0xff] }
 0x13e   :  { %v864_v46 = vpop.f32.mrf.mxu0  ;;  %3575 = vmatmul.mubr.msk.f32.gmra.mxu0 %vm287_vm0, %v229_v41  ;;  %v1929_v47 = vpop.f32.mrf.mxu1  ;;  %3966 = vmatmul.mubr.msk.f32.gmra.mxu1 %vm287_vm0, %v96_v42  ;;  %v236_v42 = vld [vmem:[%s5887_s1 + $0x290] sm:$0xff] }
 0x13f   :  { %v2576_v48 = vmax.f32 %v2451_v45, 0.0  ;;  %v1930_v49 = vadd.f32 %v1929_v47, %v864_v46  ;;  %3577 = vmatprep.mubr.msk.f32.mxu0 %vm4145_vm1, %v4144_v2  ;;  %3968 = vmatprep.mubr.msk.f32.mxu1 %vm4145_vm1, %v4144_v2 }
 0x140   :  { %v3432_v52 = vpop.f32.mrf.mxu0  ;;  %v3823_v53 = vpop.f32.mrf.mxu1 }
 0x141   :  { %2701 = vst [vmem:[#allocation2 + $0xd0] sm:$0xff] %v2576_v48  ;;  %v2452_v55 = vadd.f32 %v4833_v54, %v1930_v49  ;;  %v104_v52 = vld [vmem:[%s5886_s0 + $0x298] sm:$0xff] }
 0x142   :  { %v869_v56 = vpop.f32.mrf.mxu0  ;;  %3578 = vmatmul.mubr.msk.f32.gmra.mxu0 %vm287_vm0, %v230_v50  ;;  %v1934_v57 = vpop.f32.mrf.mxu1  ;;  %3969 = vmatmul.mubr.msk.f32.gmra.mxu1 %vm287_vm0, %v97_v51  ;;  %v237_v51 = vld [vmem:[%s5887_s1 + $0x298] sm:$0xff] }
 0x143   :  { %v2577_v58 = vmax.f32 %v2452_v55, 0.0  ;;  %v1935_v59 = vadd.f32 %v1934_v57, %v869_v56  ;;  %3580 = vmatprep.mubr.msk.f32.mxu0 %vm4145_vm1, %v4144_v2  ;;  %3971 = vmatprep.mubr.msk.f32.mxu1 %vm4145_vm1, %v4144_v2 }
 0x144   :  { %v3435_v62 = vpop.f32.mrf.mxu0  ;;  %v3826_v63 = vpop.f32.mrf.mxu1 }
 0x145   :  { %2702 = vst [vmem:[#allocation2 + $0xd8] sm:$0xff] %v2577_v58  ;;  %v2453_v0 = vadd.f32 %v4833_v54, %v1935_v59  ;;  %v105_v62 = vld [vmem:[%s5886_s0 + $0x2a0] sm:$0xff] }
 0x146   :  { %v874_v1 = vpop.f32.mrf.mxu0  ;;  %3581 = vmatmul.mubr.msk.f32.gmra.mxu0 %vm287_vm0, %v231_v60  ;;  %v1939_v3 = vpop.f32.mrf.mxu1  ;;  %3972 = vmatmul.mubr.msk.f32.gmra.mxu1 %vm287_vm0, %v98_v61  ;;  %v238_v61 = vld [vmem:[%s5887_s1 + $0x2a0] sm:$0xff] }
 0x147   :  { %v2578_v4 = vmax.f32 %v2453_v0, 0.0  ;;  %v1940_v5 = vadd.f32 %v1939_v3, %v874_v1  ;;  %3583 = vmatprep.mubr.msk.f32.mxu0 %vm4145_vm1, %v4144_v2  ;;  %3974 = vmatprep.mubr.msk.f32.mxu1 %vm4145_vm1, %v4144_v2 }
 0x148   :  { %v3438_v8 = vpop.f32.mrf.mxu0  ;;  %v3829_v9 = vpop.f32.mrf.mxu1 }
 0x149   :  { %2703 = vst [vmem:[#allocation2 + $0xe0] sm:$0xff] %v2578_v4  ;;  %v2454_v10 = vadd.f32 %v4833_v54, %v1940_v5 }
 0x14a   :  { %v879_v11 = vpop.f32.mrf.mxu0  ;;  %3584 = vmatmul.mubr.msk.f32.gmra.mxu0 %vm287_vm0, %v232_v6  ;;  %v1944_v12 = vpop.f32.mrf.mxu1  ;;  %3975 = vmatmul.mubr.msk.f32.gmra.mxu1 %vm287_vm0, %v99_v7  ;;  %v239_v7 = vld [vmem:[%s5887_s1 + $0x2a8] sm:$0xff] }
 0x14b   :  { %v2579_v13 = vmax.f32 %v2454_v10, 0.0  ;;  %v1945_v14 = vadd.f32 %v1944_v12, %v879_v11  ;;  %3586 = vmatprep.mubr.msk.f32.mxu0 %vm4145_vm1, %v4144_v2  ;;  %3977 = vmatprep.mubr.msk.f32.mxu1 %vm4145_vm1, %v4144_v2  ;;  %v5317_v10 = vld [vmem:[%s5890_s4] ss:$0 sm:$0xff] }
 0x14c   :  { %v3441_v17 = vpop.f32.mrf.mxu0  ;;  %v3832_v18 = vpop.f32.mrf.mxu1 }
 0x14d   :  { %2704 = vst [vmem:[#allocation2 + $0xe8] sm:$0xff] %v2579_v13  ;;  %v2455_v19 = vadd.f32 %v4833_v54, %v1945_v14  ;;  %v107_v17 = vld [vmem:[%s5886_s0 + $0x2b0] sm:$0xff] }
 0x14e   :  { %v884_v20 = vpop.f32.mrf.mxu0  ;;  %3587 = vmatmul.mubr.msk.f32.gmra.mxu0 %vm287_vm0, %v233_v15  ;;  %v1949_v21 = vpop.f32.mrf.mxu1  ;;  %3978 = vmatmul.mubr.msk.f32.gmra.mxu1 %vm287_vm0, %v100_v16  ;;  %v240_v16 = vld [vmem:[%s5887_s1 + $0x2b0] sm:$0xff] }
 0x14f   :  { %v2580_v22 = vmax.f32 %v2455_v19, 0.0  ;;  %v1950_v23 = vadd.f32 %v1949_v21, %v884_v20  ;;  %3589 = vmatprep.mubr.msk.f32.mxu0 %vm4145_vm1, %v4144_v2  ;;  %3980 = vmatprep.mubr.msk.f32.mxu1 %vm4145_vm1, %v4144_v2 }
 0x150   :  { %v3444_v26 = vpop.f32.mrf.mxu0  ;;  %v3835_v27 = vpop.f32.mrf.mxu1 }
 0x151   :  { %2705 = vst [vmem:[#allocation2 + $0xf0] sm:$0xff] %v2580_v22  ;;  %v2456_v28 = vadd.f32 %v4833_v54, %v1950_v23  ;;  %v108_v26 = vld [vmem:[%s5886_s0 + $0x2b8] sm:$0xff] }
 0x152   :  { %v889_v29 = vpop.f32.mrf.mxu0  ;;  %3590 = vmatmul.mubr.msk.f32.gmra.mxu0 %vm287_vm0, %v234_v24  ;;  %v1954_v30 = vpop.f32.mrf.mxu1  ;;  %3981 = vmatmul.mubr.msk.f32.gmra.mxu1 %vm287_vm0, %v101_v25  ;;  %v241_v25 = vld [vmem:[%s5887_s1 + $0x2b8] sm:$0xff] }
 0x153   :  { %v2581_v31 = vmax.f32 %v2456_v28, 0.0  ;;  %v1955_v32 = vadd.f32 %v1954_v30, %v889_v29  ;;  %3592 = vmatprep.mubr.msk.f32.mxu0 %vm4145_vm1, %v4144_v2  ;;  %3983 = vmatprep.mubr.msk.f32.mxu1 %vm4145_vm1, %v4144_v2 }
 0x154   :  { %v3447_v35 = vpop.f32.mrf.mxu0  ;;  %v3838_v36 = vpop.f32.mrf.mxu1 }
 0x155   :  { %2706 = vst [vmem:[#allocation2 + $0xf8] sm:$0xff] %v2581_v31  ;;  %v2457_v37 = vadd.f32 %v4833_v54, %v1955_v32  ;;  %v109_v35 = vld [vmem:[%s5886_s0 + $0x2c0] sm:$0xff] }
 0x156   :  { %v894_v38 = vpop.f32.mrf.mxu0  ;;  %3593 = vmatmul.mubr.msk.f32.gmra.mxu0 %vm287_vm0, %v235_v33  ;;  %v1959_v39 = vpop.f32.mrf.mxu1  ;;  %3984 = vmatmul.mubr.msk.f32.gmra.mxu1 %vm287_vm0, %v102_v34  ;;  %v242_v34 = vld [vmem:[%s5887_s1 + $0x2c0] sm:$0xff] }
 0x157   :  { %v2582_v40 = vmax.f32 %v2457_v37, 0.0  ;;  %v1960_v41 = vadd.f32 %v1959_v39, %v894_v38  ;;  %3595 = vmatprep.mubr.msk.f32.mxu0 %vm4145_vm1, %v4144_v2  ;;  %3986 = vmatprep.mubr.msk.f32.mxu1 %vm4145_vm1, %v4144_v2 }
 0x158   :  { %v3450_v44 = vpop.f32.mrf.mxu0  ;;  %v3841_v45 = vpop.f32.mrf.mxu1 }
 0x159   :  { %2707 = vst [vmem:[#allocation2 + $0x100] sm:$0xff] %v2582_v40  ;;  %v2458_v46 = vadd.f32 %v4833_v54, %v1960_v41  ;;  %v110_v44 = vld [vmem:[%s5886_s0 + $0x2c8] sm:$0xff] }
 0x15a   :  { %v899_v47 = vpop.f32.mrf.mxu0  ;;  %3596 = vmatmul.mubr.msk.f32.gmra.mxu0 %vm287_vm0, %v236_v42  ;;  %v1964_v48 = vpop.f32.mrf.mxu1  ;;  %3987 = vmatmul.mubr.msk.f32.gmra.mxu1 %vm287_vm0, %v103_v43  ;;  %v243_v43 = vld [vmem:[%s5887_s1 + $0x2c8] sm:$0xff] }
 0x15b   :  { %v2583_v49 = vmax.f32 %v2458_v46, 0.0  ;;  %v1965_v50 = vadd.f32 %v1964_v48, %v899_v47  ;;  %3598 = vmatprep.mubr.msk.f32.mxu0 %vm4145_vm1, %v4144_v2  ;;  %3989 = vmatprep.mubr.msk.f32.mxu1 %vm4145_vm1, %v4144_v2 }
 0x15c   :  { %v3453_v53 = vpop.f32.mrf.mxu0  ;;  %v3844_v55 = vpop.f32.mrf.mxu1 }
 0x15d   :  { %2708 = vst [vmem:[#allocation2 + $0x108] sm:$0xff] %v2583_v49  ;;  %v2459_v56 = vadd.f32 %v4833_v54, %v1965_v50  ;;  %v111_v53 = vld [vmem:[%s5886_s0 + $0x2d0] sm:$0xff] }
 0x15e   :  { %v904_v57 = vpop.f32.mrf.mxu0  ;;  %3599 = vmatmul.mubr.msk.f32.gmra.mxu0 %vm287_vm0, %v237_v51  ;;  %v1969_v58 = vpop.f32.mrf.mxu1  ;;  %3990 = vmatmul.mubr.msk.f32.gmra.mxu1 %vm287_vm0, %v104_v52  ;;  %v244_v52 = vld [vmem:[%s5887_s1 + $0x2d0] sm:$0xff] }
 0x15f   :  { %v2584_v59 = vmax.f32 %v2459_v56, 0.0  ;;  %v1970_v60 = vadd.f32 %v1969_v58, %v904_v57  ;;  %3601 = vmatprep.mubr.msk.f32.mxu0 %vm4145_vm1, %v4144_v2  ;;  %3992 = vmatprep.mubr.msk.f32.mxu1 %vm4145_vm1, %v4144_v2 }
 0x160   :  { %v3456_v63 = vpop.f32.mrf.mxu0  ;;  %v3847_v0 = vpop.f32.mrf.mxu1 }
 0x161   :  { %2709 = vst [vmem:[#allocation2 + $0x110] sm:$0xff] %v2584_v59  ;;  %v2460_v1 = vadd.f32 %v4833_v54, %v1970_v60  ;;  %v106_v54 = vld [vmem:[%s5886_s0 + $0x2a8] sm:$0xff]  ;;  %v112_v63 = vld [vmem:[%s5886_s0 + $0x2d8] sm:$0xff] }
 0x162   :  { %v909_v3 = vpop.f32.mrf.mxu0  ;;  %3602 = vmatmul.mubr.msk.f32.gmra.mxu0 %vm287_vm0, %v238_v61  ;;  %v1974_v4 = vpop.f32.mrf.mxu1  ;;  %3993 = vmatmul.mubr.msk.f32.gmra.mxu1 %vm287_vm0, %v105_v62  ;;  %v245_v62 = vld [vmem:[%s5887_s1 + $0x2d8] sm:$0xff] }
 0x163   :  { %v2585_v5 = vmax.f32 %v2460_v1, 0.0  ;;  %v1975_v6 = vadd.f32 %v1974_v4, %v909_v3  ;;  %3604 = vmatprep.mubr.msk.f32.mxu0 %vm4145_vm1, %v4144_v2  ;;  %3995 = vmatprep.mubr.msk.f32.mxu1 %vm4145_vm1, %v4144_v2 }
 0x164   :  { %v3459_v8 = vpop.f32.mrf.mxu0  ;;  %v3850_v9 = vpop.f32.mrf.mxu1 }
 0x165   :  { %2710 = vst [vmem:[#allocation2 + $0x118] sm:$0xff] %v2585_v5  ;;  %v2461_v11 = vadd.f32 %v5317_v10, %v1975_v6  ;;  %v113_v8 = vld [vmem:[%s5886_s0 + $0x2e0] sm:$0xff] }
 0x166   :  { %v914_v12 = vpop.f32.mrf.mxu0  ;;  %3605 = vmatmul.mubr.msk.f32.gmra.mxu0 %vm287_vm0, %v239_v7  ;;  %v1979_v13 = vpop.f32.mrf.mxu1  ;;  %3996 = vmatmul.mubr.msk.f32.gmra.mxu1 %vm287_vm0, %v106_v54  ;;  %v246_v54 = vld [vmem:[%s5887_s1 + $0x2e0] sm:$0xff] }
 0x167   :  { %v2586_v14 = vmax.f32 %v2461_v11, 0.0  ;;  %v1980_v15 = vadd.f32 %v1979_v13, %v914_v12  ;;  %3607 = vmatprep.mubr.msk.f32.mxu0 %vm4145_vm1, %v4144_v2  ;;  %3998 = vmatprep.mubr.msk.f32.mxu1 %vm4145_vm1, %v4144_v2 }
 0x168   :  { %v3462_v18 = vpop.f32.mrf.mxu0  ;;  %v3853_v19 = vpop.f32.mrf.mxu1 }
 0x169   :  { %2711 = vst [vmem:[#allocation2 + $0x120] sm:$0xff] %v2586_v14  ;;  %v2462_v20 = vadd.f32 %v5317_v10, %v1980_v15  ;;  %v114_v18 = vld [vmem:[%s5886_s0 + $0x2e8] sm:$0xff] }
 0x16a   :  { %v919_v21 = vpop.f32.mrf.mxu0  ;;  %3608 = vmatmul.mubr.msk.f32.gmra.mxu0 %vm287_vm0, %v240_v16  ;;  %v1984_v22 = vpop.f32.mrf.mxu1  ;;  %3999 = vmatmul.mubr.msk.f32.gmra.mxu1 %vm287_vm0, %v107_v17  ;;  %v247_v17 = vld [vmem:[%s5887_s1 + $0x2e8] sm:$0xff] }
 0x16b   :  { %v2587_v23 = vmax.f32 %v2462_v20, 0.0  ;;  %v1985_v24 = vadd.f32 %v1984_v22, %v919_v21  ;;  %3610 = vmatprep.mubr.msk.f32.mxu0 %vm4145_vm1, %v4144_v2  ;;  %4001 = vmatprep.mubr.msk.f32.mxu1 %vm4145_vm1, %v4144_v2 }
 0x16c   :  { %v3465_v27 = vpop.f32.mrf.mxu0  ;;  %v3856_v28 = vpop.f32.mrf.mxu1 }
 0x16d   :  { %2712 = vst [vmem:[#allocation2 + $0x128] sm:$0xff] %v2587_v23  ;;  %v2463_v29 = vadd.f32 %v5317_v10, %v1985_v24  ;;  %v115_v27 = vld [vmem:[%s5886_s0 + $0x2f0] sm:$0xff] }
 0x16e   :  { %v924_v30 = vpop.f32.mrf.mxu0  ;;  %3611 = vmatmul.mubr.msk.f32.gmra.mxu0 %vm287_vm0, %v241_v25  ;;  %v1989_v31 = vpop.f32.mrf.mxu1  ;;  %4002 = vmatmul.mubr.msk.f32.gmra.mxu1 %vm287_vm0, %v108_v26  ;;  %v248_v26 = vld [vmem:[%s5887_s1 + $0x2f0] sm:$0xff] }
 0x16f   :  { %v2588_v32 = vmax.f32 %v2463_v29, 0.0  ;;  %v1990_v33 = vadd.f32 %v1989_v31, %v924_v30  ;;  %3613 = vmatprep.mubr.msk.f32.mxu0 %vm4145_vm1, %v4144_v2  ;;  %4004 = vmatprep.mubr.msk.f32.mxu1 %vm4145_vm1, %v4144_v2 }
 0x170   :  { %v3468_v36 = vpop.f32.mrf.mxu0  ;;  %v3859_v37 = vpop.f32.mrf.mxu1 }
 0x171   :  { %2713 = vst [vmem:[#allocation2 + $0x130] sm:$0xff] %v2588_v32  ;;  %v2464_v38 = vadd.f32 %v5317_v10, %v1990_v33  ;;  %v116_v36 = vld [vmem:[%s5886_s0 + $0x2f8] sm:$0xff] }
 0x172   :  { %v929_v39 = vpop.f32.mrf.mxu0  ;;  %3614 = vmatmul.mubr.msk.f32.gmra.mxu0 %vm287_vm0, %v242_v34  ;;  %v1994_v40 = vpop.f32.mrf.mxu1  ;;  %4005 = vmatmul.mubr.msk.f32.gmra.mxu1 %vm287_vm0, %v109_v35  ;;  %v249_v35 = vld [vmem:[%s5887_s1 + $0x2f8] sm:$0xff] }
 0x173   :  { %v2589_v41 = vmax.f32 %v2464_v38, 0.0  ;;  %v1995_v42 = vadd.f32 %v1994_v40, %v929_v39  ;;  %3616 = vmatprep.mubr.msk.f32.mxu0 %vm4145_vm1, %v4144_v2  ;;  %4007 = vmatprep.mubr.msk.f32.mxu1 %vm4145_vm1, %v4144_v2 }
 0x174   :  { %v3471_v45 = vpop.f32.mrf.mxu0  ;;  %v3862_v46 = vpop.f32.mrf.mxu1 }
 0x175   :  { %2714 = vst [vmem:[#allocation2 + $0x138] sm:$0xff] %v2589_v41  ;;  %v2465_v47 = vadd.f32 %v5317_v10, %v1995_v42  ;;  %v117_v45 = vld [vmem:[%s5886_s0 + $0x300] sm:$0xff] }
 0x176   :  { %v934_v48 = vpop.f32.mrf.mxu0  ;;  %3617 = vmatmul.mubr.msk.f32.gmra.mxu0 %vm287_vm0, %v243_v43  ;;  %v1999_v49 = vpop.f32.mrf.mxu1  ;;  %4008 = vmatmul.mubr.msk.f32.gmra.mxu1 %vm287_vm0, %v110_v44  ;;  %v250_v44 = vld [vmem:[%s5887_s1 + $0x300] sm:$0xff] }
 0x177   :  { %v2590_v50 = vmax.f32 %v2465_v47, 0.0  ;;  %v2000_v51 = vadd.f32 %v1999_v49, %v934_v48  ;;  %3619 = vmatprep.mubr.msk.f32.mxu0 %vm4145_vm1, %v4144_v2  ;;  %4010 = vmatprep.mubr.msk.f32.mxu1 %vm4145_vm1, %v4144_v2 }
 0x178   :  { %v3474_v55 = vpop.f32.mrf.mxu0  ;;  %v3865_v56 = vpop.f32.mrf.mxu1 }
 0x179   :  { %2715 = vst [vmem:[#allocation2 + $0x140] sm:$0xff] %v2590_v50  ;;  %v2466_v57 = vadd.f32 %v5317_v10, %v2000_v51  ;;  %v118_v55 = vld [vmem:[%s5886_s0 + $0x308] sm:$0xff] }
 0x17a   :  { %v939_v58 = vpop.f32.mrf.mxu0  ;;  %3620 = vmatmul.mubr.msk.f32.gmra.mxu0 %vm287_vm0, %v244_v52  ;;  %v2004_v59 = vpop.f32.mrf.mxu1  ;;  %4011 = vmatmul.mubr.msk.f32.gmra.mxu1 %vm287_vm0, %v111_v53  ;;  %v251_v53 = vld [vmem:[%s5887_s1 + $0x308] sm:$0xff] }
 0x17b   :  { %v2591_v60 = vmax.f32 %v2466_v57, 0.0  ;;  %v2005_v61 = vadd.f32 %v2004_v59, %v939_v58  ;;  %3622 = vmatprep.mubr.msk.f32.mxu0 %vm4145_vm1, %v4144_v2  ;;  %4013 = vmatprep.mubr.msk.f32.mxu1 %vm4145_vm1, %v4144_v2 }
 0x17c   :  { %v3477_v0 = vpop.f32.mrf.mxu0  ;;  %v3868_v1 = vpop.f32.mrf.mxu1 }
 0x17d   :  { %2716 = vst [vmem:[#allocation2 + $0x148] sm:$0xff] %v2591_v60  ;;  %v2467_v3 = vadd.f32 %v5317_v10, %v2005_v61  ;;  %v119_v0 = vld [vmem:[%s5886_s0 + $0x310] sm:$0xff] }
 0x17e   :  { %v944_v4 = vpop.f32.mrf.mxu0  ;;  %3623 = vmatmul.mubr.msk.f32.gmra.mxu0 %vm287_vm0, %v245_v62  ;;  %v2009_v5 = vpop.f32.mrf.mxu1  ;;  %4014 = vmatmul.mubr.msk.f32.gmra.mxu1 %vm287_vm0, %v112_v63  ;;  %v252_v63 = vld [vmem:[%s5887_s1 + $0x310] sm:$0xff] }
 0x17f   :  { %v2592_v6 = vmax.f32 %v2467_v3, 0.0  ;;  %v2010_v7 = vadd.f32 %v2009_v5, %v944_v4  ;;  %3625 = vmatprep.mubr.msk.f32.mxu0 %vm4145_vm1, %v4144_v2  ;;  %4016 = vmatprep.mubr.msk.f32.mxu1 %vm4145_vm1, %v4144_v2 }
 0x180   :  { %v3480_v9 = vpop.f32.mrf.mxu0  ;;  %v3871_v11 = vpop.f32.mrf.mxu1 }
 0x181   :  { %2717 = vst [vmem:[#allocation2 + $0x150] sm:$0xff] %v2592_v6  ;;  %v2468_v12 = vadd.f32 %v5317_v10, %v2010_v7  ;;  %v120_v9 = vld [vmem:[%s5886_s0 + $0x318] sm:$0xff] }
 0x182   :  { %v949_v13 = vpop.f32.mrf.mxu0  ;;  %3626 = vmatmul.mubr.msk.f32.gmra.mxu0 %vm287_vm0, %v246_v54  ;;  %v2014_v14 = vpop.f32.mrf.mxu1  ;;  %4017 = vmatmul.mubr.msk.f32.gmra.mxu1 %vm287_vm0, %v113_v8  ;;  %v253_v8 = vld [vmem:[%s5887_s1 + $0x318] sm:$0xff] }
 0x183   :  { %v2593_v15 = vmax.f32 %v2468_v12, 0.0  ;;  %v2015_v16 = vadd.f32 %v2014_v14, %v949_v13  ;;  %3628 = vmatprep.mubr.msk.f32.mxu0 %vm4145_vm1, %v4144_v2  ;;  %4019 = vmatprep.mubr.msk.f32.mxu1 %vm4145_vm1, %v4144_v2 }
 0x184   :  { %v3483_v19 = vpop.f32.mrf.mxu0  ;;  %v3874_v20 = vpop.f32.mrf.mxu1 }
 0x185   :  { %2718 = vst [vmem:[#allocation2 + $0x158] sm:$0xff] %v2593_v15  ;;  %v2469_v21 = vadd.f32 %v5317_v10, %v2015_v16  ;;  %v121_v19 = vld [vmem:[%s5886_s0 + $0x320] sm:$0xff] }
 0x186   :  { %v954_v22 = vpop.f32.mrf.mxu0  ;;  %3629 = vmatmul.mubr.msk.f32.gmra.mxu0 %vm287_vm0, %v247_v17  ;;  %v2019_v23 = vpop.f32.mrf.mxu1  ;;  %4020 = vmatmul.mubr.msk.f32.gmra.mxu1 %vm287_vm0, %v114_v18  ;;  %v254_v18 = vld [vmem:[%s5887_s1 + $0x320] sm:$0xff] }
 0x187   :  { %v2594_v24 = vmax.f32 %v2469_v21, 0.0  ;;  %v2020_v25 = vadd.f32 %v2019_v23, %v954_v22  ;;  %3631 = vmatprep.mubr.msk.f32.mxu0 %vm4145_vm1, %v4144_v2  ;;  %4022 = vmatprep.mubr.msk.f32.mxu1 %vm4145_vm1, %v4144_v2 }
 0x188   :  { %v3486_v28 = vpop.f32.mrf.mxu0  ;;  %v3877_v29 = vpop.f32.mrf.mxu1 }
 0x189   :  { %2719 = vst [vmem:[#allocation2 + $0x160] sm:$0xff] %v2594_v24  ;;  %v2470_v30 = vadd.f32 %v5317_v10, %v2020_v25  ;;  %v122_v28 = vld [vmem:[%s5886_s0 + $0x328] sm:$0xff] }
 0x18a   :  { %v959_v31 = vpop.f32.mrf.mxu0  ;;  %3632 = vmatmul.mubr.msk.f32.gmra.mxu0 %vm287_vm0, %v248_v26  ;;  %v2024_v32 = vpop.f32.mrf.mxu1  ;;  %4023 = vmatmul.mubr.msk.f32.gmra.mxu1 %vm287_vm0, %v115_v27  ;;  %v255_v27 = vld [vmem:[%s5887_s1 + $0x328] sm:$0xff] }
 0x18b   :  { %v2595_v33 = vmax.f32 %v2470_v30, 0.0  ;;  %v2025_v34 = vadd.f32 %v2024_v32, %v959_v31  ;;  %3634 = vmatprep.mubr.msk.f32.mxu0 %vm4145_vm1, %v4144_v2  ;;  %4025 = vmatprep.mubr.msk.f32.mxu1 %vm4145_vm1, %v4144_v2 }
 0x18c   :  { %v3489_v37 = vpop.f32.mrf.mxu0  ;;  %v3880_v38 = vpop.f32.mrf.mxu1 }
 0x18d   :  { %2720 = vst [vmem:[#allocation2 + $0x168] sm:$0xff] %v2595_v33  ;;  %v2471_v39 = vadd.f32 %v5317_v10, %v2025_v34  ;;  %v123_v37 = vld [vmem:[%s5886_s0 + $0x330] sm:$0xff] }
 0x18e   :  { %v964_v40 = vpop.f32.mrf.mxu0  ;;  %3635 = vmatmul.mubr.msk.f32.gmra.mxu0 %vm287_vm0, %v249_v35  ;;  %v2029_v41 = vpop.f32.mrf.mxu1  ;;  %4026 = vmatmul.mubr.msk.f32.gmra.mxu1 %vm287_vm0, %v116_v36  ;;  %v256_v36 = vld [vmem:[%s5887_s1 + $0x330] sm:$0xff] }
 0x18f   :  { %v2596_v42 = vmax.f32 %v2471_v39, 0.0  ;;  %v2030_v43 = vadd.f32 %v2029_v41, %v964_v40  ;;  %3637 = vmatprep.mubr.msk.f32.mxu0 %vm4145_vm1, %v4144_v2  ;;  %4028 = vmatprep.mubr.msk.f32.mxu1 %vm4145_vm1, %v4144_v2 }
 0x190   :  { %v3492_v46 = vpop.f32.mrf.mxu0  ;;  %v3883_v47 = vpop.f32.mrf.mxu1 }
 0x191   :  { %2721 = vst [vmem:[#allocation2 + $0x170] sm:$0xff] %v2596_v42  ;;  %v2472_v48 = vadd.f32 %v5317_v10, %v2030_v43  ;;  %v124_v46 = vld [vmem:[%s5886_s0 + $0x338] sm:$0xff] }
 0x192   :  { %v969_v49 = vpop.f32.mrf.mxu0  ;;  %3638 = vmatmul.mubr.msk.f32.gmra.mxu0 %vm287_vm0, %v250_v44  ;;  %v2034_v50 = vpop.f32.mrf.mxu1  ;;  %4029 = vmatmul.mubr.msk.f32.gmra.mxu1 %vm287_vm0, %v117_v45  ;;  %v257_v45 = vld [vmem:[%s5887_s1 + $0x338] sm:$0xff] }
 0x193   :  { %v2597_v51 = vmax.f32 %v2472_v48, 0.0  ;;  %v2035_v52 = vadd.f32 %v2034_v50, %v969_v49  ;;  %3640 = vmatprep.mubr.msk.f32.mxu0 %vm4145_vm1, %v4144_v2  ;;  %4031 = vmatprep.mubr.msk.f32.mxu1 %vm4145_vm1, %v4144_v2 }
 0x194   :  { %v3495_v56 = vpop.f32.mrf.mxu0  ;;  %v3886_v57 = vpop.f32.mrf.mxu1 }
 0x195   :  { %2722 = vst [vmem:[#allocation2 + $0x178] sm:$0xff] %v2597_v51  ;;  %v2473_v58 = vadd.f32 %v5317_v10, %v2035_v52  ;;  %v125_v56 = vld [vmem:[%s5886_s0 + $0x340] sm:$0xff] }
 0x196   :  { %v974_v59 = vpop.f32.mrf.mxu0  ;;  %3641 = vmatmul.mubr.msk.f32.gmra.mxu0 %vm287_vm0, %v251_v53  ;;  %v2039_v60 = vpop.f32.mrf.mxu1  ;;  %4032 = vmatmul.mubr.msk.f32.gmra.mxu1 %vm287_vm0, %v118_v55  ;;  %v258_v55 = vld [vmem:[%s5887_s1 + $0x340] sm:$0xff] }
 0x197   :  { %v2598_v61 = vmax.f32 %v2473_v58, 0.0  ;;  %v2040_v62 = vadd.f32 %v2039_v60, %v974_v59  ;;  %3643 = vmatprep.mubr.msk.f32.mxu0 %vm4145_vm1, %v4144_v2  ;;  %4034 = vmatprep.mubr.msk.f32.mxu1 %vm4145_vm1, %v4144_v2 }
 0x198   :  { %v3498_v1 = vpop.f32.mrf.mxu0  ;;  %v3889_v3 = vpop.f32.mrf.mxu1 }
 0x199   :  { %2723 = vst [vmem:[#allocation2 + $0x180] sm:$0xff] %v2598_v61  ;;  %v2474_v4 = vadd.f32 %v5317_v10, %v2040_v62  ;;  %v126_v1 = vld [vmem:[%s5886_s0 + $0x348] sm:$0xff] }
 0x19a   :  { %v979_v5 = vpop.f32.mrf.mxu0  ;;  %3644 = vmatmul.mubr.msk.f32.gmra.mxu0 %vm287_vm0, %v252_v63  ;;  %v2044_v6 = vpop.f32.mrf.mxu1  ;;  %4035 = vmatmul.mubr.msk.f32.gmra.mxu1 %vm287_vm0, %v119_v0  ;;  %v259_v0 = vld [vmem:[%s5887_s1 + $0x348] sm:$0xff] }
 0x19b   :  { %v2599_v7 = vmax.f32 %v2474_v4, 0.0  ;;  %v2045_v54 = vadd.f32 %v2044_v6, %v979_v5  ;;  %3646 = vmatprep.mubr.msk.f32.mxu0 %vm4145_vm1, %v4144_v2  ;;  %4037 = vmatprep.mubr.msk.f32.mxu1 %vm4145_vm1, %v4144_v2 }
 0x19c   :  { %v3501_v11 = vpop.f32.mrf.mxu0  ;;  %v3892_v12 = vpop.f32.mrf.mxu1 }
 0x19d   :  { %2724 = vst [vmem:[#allocation2 + $0x188] sm:$0xff] %v2599_v7  ;;  %v2475_v13 = vadd.f32 %v5317_v10, %v2045_v54  ;;  %v127_v11 = vld [vmem:[%s5886_s0 + $0x350] sm:$0xff] }
 0x19e   :  { %v984_v14 = vpop.f32.mrf.mxu0  ;;  %3647 = vmatmul.mubr.msk.f32.gmra.mxu0 %vm287_vm0, %v253_v8  ;;  %v2049_v15 = vpop.f32.mrf.mxu1  ;;  %4038 = vmatmul.mubr.msk.f32.gmra.mxu1 %vm287_vm0, %v120_v9  ;;  %v260_v9 = vld [vmem:[%s5887_s1 + $0x350] sm:$0xff] }
 0x19f   :  { %v2600_v16 = vmax.f32 %v2475_v13, 0.0  ;;  %v2050_v17 = vadd.f32 %v2049_v15, %v984_v14  ;;  %3649 = vmatprep.mubr.msk.f32.mxu0 %vm4145_vm1, %v4144_v2  ;;  %4040 = vmatprep.mubr.msk.f32.mxu1 %vm4145_vm1, %v4144_v2 }
 0x1a0   :  { %v3504_v20 = vpop.f32.mrf.mxu0  ;;  %v3895_v21 = vpop.f32.mrf.mxu1 }
 0x1a1   :  { %2725 = vst [vmem:[#allocation2 + $0x190] sm:$0xff] %v2600_v16  ;;  %v2476_v22 = vadd.f32 %v5317_v10, %v2050_v17  ;;  %v128_v20 = vld [vmem:[%s5886_s0 + $0x358] sm:$0xff] }
 0x1a2   :  { %v989_v23 = vpop.f32.mrf.mxu0  ;;  %3650 = vmatmul.mubr.msk.f32.gmra.mxu0 %vm287_vm0, %v254_v18  ;;  %v2054_v24 = vpop.f32.mrf.mxu1  ;;  %4041 = vmatmul.mubr.msk.f32.gmra.mxu1 %vm287_vm0, %v121_v19  ;;  %v261_v19 = vld [vmem:[%s5887_s1 + $0x358] sm:$0xff] }
 0x1a3   :  { %v2601_v25 = vmax.f32 %v2476_v22, 0.0  ;;  %v2055_v26 = vadd.f32 %v2054_v24, %v989_v23  ;;  %3652 = vmatprep.mubr.msk.f32.mxu0 %vm4145_vm1, %v4144_v2  ;;  %4043 = vmatprep.mubr.msk.f32.mxu1 %vm4145_vm1, %v4144_v2 }
 0x1a4   :  { %v3507_v29 = vpop.f32.mrf.mxu0  ;;  %v3898_v30 = vpop.f32.mrf.mxu1 }
 0x1a5   :  { %2726 = vst [vmem:[#allocation2 + $0x198] sm:$0xff] %v2601_v25  ;;  %v2477_v31 = vadd.f32 %v5317_v10, %v2055_v26  ;;  %v129_v29 = vld [vmem:[%s5886_s0 + $0x360] sm:$0xff] }
 0x1a6   :  { %v994_v32 = vpop.f32.mrf.mxu0  ;;  %3653 = vmatmul.mubr.msk.f32.gmra.mxu0 %vm287_vm0, %v255_v27  ;;  %v2059_v33 = vpop.f32.mrf.mxu1  ;;  %4044 = vmatmul.mubr.msk.f32.gmra.mxu1 %vm287_vm0, %v122_v28  ;;  %v262_v28 = vld [vmem:[%s5887_s1 + $0x360] sm:$0xff] }
 0x1a7   :  { %v2602_v34 = vmax.f32 %v2477_v31, 0.0  ;;  %v2060_v35 = vadd.f32 %v2059_v33, %v994_v32  ;;  %3655 = vmatprep.mubr.msk.f32.mxu0 %vm4145_vm1, %v4144_v2  ;;  %4046 = vmatprep.mubr.msk.f32.mxu1 %vm4145_vm1, %v4144_v2 }
 0x1a8   :  { %v3510_v38 = vpop.f32.mrf.mxu0  ;;  %v3901_v39 = vpop.f32.mrf.mxu1 }
 0x1a9   :  { %2727 = vst [vmem:[#allocation2 + $0x1a0] sm:$0xff] %v2602_v34  ;;  %v2478_v40 = vadd.f32 %v5317_v10, %v2060_v35  ;;  %v130_v38 = vld [vmem:[%s5886_s0 + $0x368] sm:$0xff] }
 0x1aa   :  { %v999_v41 = vpop.f32.mrf.mxu0  ;;  %3656 = vmatmul.mubr.msk.f32.gmra.mxu0 %vm287_vm0, %v256_v36  ;;  %v2064_v42 = vpop.f32.mrf.mxu1  ;;  %4047 = vmatmul.mubr.msk.f32.gmra.mxu1 %vm287_vm0, %v123_v37  ;;  %v263_v37 = vld [vmem:[%s5887_s1 + $0x368] sm:$0xff] }
 0x1ab   :  { %v2603_v43 = vmax.f32 %v2478_v40, 0.0  ;;  %v2065_v44 = vadd.f32 %v2064_v42, %v999_v41  ;;  %3658 = vmatprep.mubr.msk.f32.mxu0 %vm4145_vm1, %v4144_v2  ;;  %4049 = vmatprep.mubr.msk.f32.mxu1 %vm4145_vm1, %v4144_v2 }
 0x1ac   :  { %v3513_v47 = vpop.f32.mrf.mxu0  ;;  %v3904_v48 = vpop.f32.mrf.mxu1 }
 0x1ad   :  { %2728 = vst [vmem:[#allocation2 + $0x1a8] sm:$0xff] %v2603_v43  ;;  %v2479_v49 = vadd.f32 %v5317_v10, %v2065_v44  ;;  %v131_v47 = vld [vmem:[%s5886_s0 + $0x370] sm:$0xff] }
 0x1ae   :  { %v1004_v50 = vpop.f32.mrf.mxu0  ;;  %3659 = vmatmul.mubr.msk.f32.gmra.mxu0 %vm287_vm0, %v257_v45  ;;  %v2069_v51 = vpop.f32.mrf.mxu1  ;;  %4050 = vmatmul.mubr.msk.f32.gmra.mxu1 %vm287_vm0, %v124_v46  ;;  %v264_v46 = vld [vmem:[%s5887_s1 + $0x370] sm:$0xff] }
 0x1af   :  { %v2604_v52 = vmax.f32 %v2479_v49, 0.0  ;;  %v2070_v53 = vadd.f32 %v2069_v51, %v1004_v50  ;;  %3661 = vmatprep.mubr.msk.f32.mxu0 %vm4145_vm1, %v4144_v2  ;;  %4052 = vmatprep.mubr.msk.f32.mxu1 %vm4145_vm1, %v4144_v2 }
 0x1b0   :  { %v3516_v57 = vpop.f32.mrf.mxu0  ;;  %v3907_v58 = vpop.f32.mrf.mxu1 }
 0x1b1   :  { %2729 = vst [vmem:[#allocation2 + $0x1b0] sm:$0xff] %v2604_v52  ;;  %v2480_v59 = vadd.f32 %v5317_v10, %v2070_v53  ;;  %v132_v57 = vld [vmem:[%s5886_s0 + $0x378] sm:$0xff] }
 0x1b2   :  { %v1009_v60 = vpop.f32.mrf.mxu0  ;;  %3662 = vmatmul.mubr.msk.f32.gmra.mxu0 %vm287_vm0, %v258_v55  ;;  %v2074_v61 = vpop.f32.mrf.mxu1  ;;  %4053 = vmatmul.mubr.msk.f32.gmra.mxu1 %vm287_vm0, %v125_v56  ;;  %v265_v56 = vld [vmem:[%s5887_s1 + $0x378] sm:$0xff] }
 0x1b3   :  { %v2605_v62 = vmax.f32 %v2480_v59, 0.0  ;;  %v2075_v63 = vadd.f32 %v2074_v61, %v1009_v60  ;;  %3664 = vmatprep.mubr.msk.f32.mxu0 %vm4145_vm1, %v4144_v2  ;;  %4055 = vmatprep.mubr.msk.f32.mxu1 %vm4145_vm1, %v4144_v2 }
 0x1b4   :  { %v3519_v3 = vpop.f32.mrf.mxu0  ;;  %v3910_v4 = vpop.f32.mrf.mxu1 }
 0x1b5   :  { %2730 = vst [vmem:[#allocation2 + $0x1b8] sm:$0xff] %v2605_v62  ;;  %v2481_v5 = vadd.f32 %v5317_v10, %v2075_v63  ;;  %v133_v3 = vld [vmem:[%s5886_s0 + $0x380] sm:$0xff] }
 0x1b6   :  { %v1014_v6 = vpop.f32.mrf.mxu0  ;;  %3665 = vmatmul.mubr.msk.f32.gmra.mxu0 %vm287_vm0, %v259_v0  ;;  %v2079_v7 = vpop.f32.mrf.mxu1  ;;  %4056 = vmatmul.mubr.msk.f32.gmra.mxu1 %vm287_vm0, %v126_v1  ;;  %v266_v1 = vld [vmem:[%s5887_s1 + $0x380] sm:$0xff] }
 0x1b7   :  { %v2606_v54 = vmax.f32 %v2481_v5, 0.0  ;;  %v2080_v8 = vadd.f32 %v2079_v7, %v1014_v6  ;;  %3667 = vmatprep.mubr.msk.f32.mxu0 %vm4145_vm1, %v4144_v2  ;;  %4058 = vmatprep.mubr.msk.f32.mxu1 %vm4145_vm1, %v4144_v2 }
 0x1b8   :  { %v3522_v12 = vpop.f32.mrf.mxu0  ;;  %v3913_v13 = vpop.f32.mrf.mxu1 }
 0x1b9   :  { %2731 = vst [vmem:[#allocation2 + $0x1c0] sm:$0xff] %v2606_v54  ;;  %v2482_v14 = vadd.f32 %v5317_v10, %v2080_v8  ;;  %v134_v12 = vld [vmem:[%s5886_s0 + $0x388] sm:$0xff] }
 0x1ba   :  { %v1019_v15 = vpop.f32.mrf.mxu0  ;;  %3668 = vmatmul.mubr.msk.f32.gmra.mxu0 %vm287_vm0, %v260_v9  ;;  %v2084_v16 = vpop.f32.mrf.mxu1  ;;  %4059 = vmatmul.mubr.msk.f32.gmra.mxu1 %vm287_vm0, %v127_v11  ;;  %v267_v11 = vld [vmem:[%s5887_s1 + $0x388] sm:$0xff] }
 0x1bb   :  { %v2607_v17 = vmax.f32 %v2482_v14, 0.0  ;;  %v2085_v18 = vadd.f32 %v2084_v16, %v1019_v15  ;;  %3670 = vmatprep.mubr.msk.f32.mxu0 %vm4145_vm1, %v4144_v2  ;;  %4061 = vmatprep.mubr.msk.f32.mxu1 %vm4145_vm1, %v4144_v2 }
 0x1bc   :  { %v3525_v21 = vpop.f32.mrf.mxu0  ;;  %v3916_v22 = vpop.f32.mrf.mxu1 }
 0x1bd   :  { %2732 = vst [vmem:[#allocation2 + $0x1c8] sm:$0xff] %v2607_v17  ;;  %v2483_v23 = vadd.f32 %v5317_v10, %v2085_v18  ;;  %v135_v21 = vld [vmem:[%s5886_s0 + $0x390] sm:$0xff] }
 0x1be   :  { %v1024_v24 = vpop.f32.mrf.mxu0  ;;  %3671 = vmatmul.mubr.msk.f32.gmra.mxu0 %vm287_vm0, %v261_v19  ;;  %v2089_v25 = vpop.f32.mrf.mxu1  ;;  %4062 = vmatmul.mubr.msk.f32.gmra.mxu1 %vm287_vm0, %v128_v20  ;;  %v268_v20 = vld [vmem:[%s5887_s1 + $0x390] sm:$0xff] }
 0x1bf   :  { %v2608_v26 = vmax.f32 %v2483_v23, 0.0  ;;  %v2090_v27 = vadd.f32 %v2089_v25, %v1024_v24  ;;  %3673 = vmatprep.mubr.msk.f32.mxu0 %vm4145_vm1, %v4144_v2  ;;  %4064 = vmatprep.mubr.msk.f32.mxu1 %vm4145_vm1, %v4144_v2 }
 0x1c0   :  { %v3528_v30 = vpop.f32.mrf.mxu0  ;;  %v3919_v31 = vpop.f32.mrf.mxu1 }
 0x1c1   :  { %2733 = vst [vmem:[#allocation2 + $0x1d0] sm:$0xff] %v2608_v26  ;;  %v2484_v32 = vadd.f32 %v5317_v10, %v2090_v27  ;;  %v136_v30 = vld [vmem:[%s5886_s0 + $0x398] sm:$0xff] }
 0x1c2   :  { %v1029_v33 = vpop.f32.mrf.mxu0  ;;  %3674 = vmatmul.mubr.msk.f32.gmra.mxu0 %vm287_vm0, %v262_v28  ;;  %v2094_v34 = vpop.f32.mrf.mxu1  ;;  %4065 = vmatmul.mubr.msk.f32.gmra.mxu1 %vm287_vm0, %v129_v29  ;;  %v269_v29 = vld [vmem:[%s5887_s1 + $0x398] sm:$0xff] }
 0x1c3   :  { %v2609_v35 = vmax.f32 %v2484_v32, 0.0  ;;  %v2095_v36 = vadd.f32 %v2094_v34, %v1029_v33  ;;  %3676 = vmatprep.mubr.msk.f32.mxu0 %vm4145_vm1, %v4144_v2  ;;  %4067 = vmatprep.mubr.msk.f32.mxu1 %vm4145_vm1, %v4144_v2 }
 0x1c4   :  { %v3531_v39 = vpop.f32.mrf.mxu0  ;;  %v3922_v40 = vpop.f32.mrf.mxu1 }
 0x1c5   :  { %2734 = vst [vmem:[#allocation2 + $0x1d8] sm:$0xff] %v2609_v35  ;;  %v2485_v41 = vadd.f32 %v5317_v10, %v2095_v36  ;;  %v137_v39 = vld [vmem:[%s5886_s0 + $0x3a0] sm:$0xff] }
 0x1c6   :  { %v1034_v42 = vpop.f32.mrf.mxu0  ;;  %3677 = vmatmul.mubr.msk.f32.gmra.mxu0 %vm287_vm0, %v263_v37  ;;  %v2099_v43 = vpop.f32.mrf.mxu1  ;;  %4068 = vmatmul.mubr.msk.f32.gmra.mxu1 %vm287_vm0, %v130_v38  ;;  %v270_v38 = vld [vmem:[%s5887_s1 + $0x3a0] sm:$0xff] }
 0x1c7   :  { %v2610_v44 = vmax.f32 %v2485_v41, 0.0  ;;  %v2100_v45 = vadd.f32 %v2099_v43, %v1034_v42  ;;  %3679 = vmatprep.mubr.msk.f32.mxu0 %vm4145_vm1, %v4144_v2  ;;  %4070 = vmatprep.mubr.msk.f32.mxu1 %vm4145_vm1, %v4144_v2 }
 0x1c8   :  { %v3534_v48 = vpop.f32.mrf.mxu0  ;;  %v3925_v49 = vpop.f32.mrf.mxu1 }
 0x1c9   :  { %2735 = vst [vmem:[#allocation2 + $0x1e0] sm:$0xff] %v2610_v44  ;;  %v2486_v50 = vadd.f32 %v5317_v10, %v2100_v45  ;;  %v138_v48 = vld [vmem:[%s5886_s0 + $0x3a8] sm:$0xff] }
 0x1ca   :  { %v1039_v51 = vpop.f32.mrf.mxu0  ;;  %3680 = vmatmul.mubr.msk.f32.gmra.mxu0 %vm287_vm0, %v264_v46  ;;  %v2104_v52 = vpop.f32.mrf.mxu1  ;;  %4071 = vmatmul.mubr.msk.f32.gmra.mxu1 %vm287_vm0, %v131_v47  ;;  %v271_v47 = vld [vmem:[%s5887_s1 + $0x3a8] sm:$0xff] }
 0x1cb   :  { %v2611_v53 = vmax.f32 %v2486_v50, 0.0  ;;  %v2105_v55 = vadd.f32 %v2104_v52, %v1039_v51  ;;  %3682 = vmatprep.mubr.msk.f32.mxu0 %vm4145_vm1, %v4144_v2  ;;  %4073 = vmatprep.mubr.msk.f32.mxu1 %vm4145_vm1, %v4144_v2 }
 0x1cc   :  { %v3537_v58 = vpop.f32.mrf.mxu0  ;;  %v3928_v59 = vpop.f32.mrf.mxu1 }
 0x1cd   :  { %2736 = vst [vmem:[#allocation2 + $0x1e8] sm:$0xff] %v2611_v53  ;;  %v2487_v60 = vadd.f32 %v5317_v10, %v2105_v55  ;;  %v139_v58 = vld [vmem:[%s5886_s0 + $0x3b0] sm:$0xff] }
 0x1ce   :  { %v1044_v61 = vpop.f32.mrf.mxu0  ;;  %3683 = vmatmul.mubr.msk.f32.gmra.mxu0 %vm287_vm0, %v265_v56  ;;  %v2109_v62 = vpop.f32.mrf.mxu1  ;;  %4074 = vmatmul.mubr.msk.f32.gmra.mxu1 %vm287_vm0, %v132_v57  ;;  %v272_v57 = vld [vmem:[%s5887_s1 + $0x3b0] sm:$0xff] }
 0x1cf   :  { %v2612_v63 = vmax.f32 %v2487_v60, 0.0  ;;  %v2110_v0 = vadd.f32 %v2109_v62, %v1044_v61  ;;  %3685 = vmatprep.mubr.msk.f32.mxu0 %vm4145_vm1, %v4144_v2  ;;  %4076 = vmatprep.mubr.msk.f32.mxu1 %vm4145_vm1, %v4144_v2 }
 0x1d0   :  { %v3540_v4 = vpop.f32.mrf.mxu0  ;;  %v3931_v5 = vpop.f32.mrf.mxu1 }
 0x1d1   :  { %2737 = vst [vmem:[#allocation2 + $0x1f0] sm:$0xff] %v2612_v63  ;;  %v2488_v6 = vadd.f32 %v5317_v10, %v2110_v0  ;;  %v140_v4 = vld [vmem:[%s5886_s0 + $0x3b8] sm:$0xff] }
 0x1d2   :  { %v1049_v7 = vpop.f32.mrf.mxu0  ;;  %3686 = vmatmul.mubr.msk.f32.gmra.mxu0 %vm287_vm0, %v266_v1  ;;  %v2114_v54 = vpop.f32.mrf.mxu1  ;;  %4077 = vmatmul.mubr.msk.f32.gmra.mxu1 %vm287_vm0, %v133_v3  ;;  %v273_v3 = vld [vmem:[%s5887_s1 + $0x3b8] sm:$0xff] }
 0x1d3   :  { %v2613_v8 = vmax.f32 %v2488_v6, 0.0  ;;  %v2115_v9 = vadd.f32 %v2114_v54, %v1049_v7  ;;  %3688 = vmatprep.mubr.msk.f32.mxu0 %vm4145_vm1, %v4144_v2  ;;  %4079 = vmatprep.mubr.msk.f32.mxu1 %vm4145_vm1, %v4144_v2 }
 0x1d4   :  { %v3543_v13 = vpop.f32.mrf.mxu0  ;;  %v3934_v14 = vpop.f32.mrf.mxu1 }
 0x1d5   :  { %2738 = vst [vmem:[#allocation2 + $0x1f8] sm:$0xff] %v2613_v8  ;;  %v2489_v15 = vadd.f32 %v5317_v10, %v2115_v9  ;;  %v141_v13 = vld [vmem:[%s5886_s0 + $0x3c0] sm:$0xff] }
 0x1d6   :  { %v1054_v16 = vpop.f32.mrf.mxu0  ;;  %3689 = vmatmul.mubr.msk.f32.gmra.mxu0 %vm287_vm0, %v267_v11  ;;  %v2119_v17 = vpop.f32.mrf.mxu1  ;;  %4080 = vmatmul.mubr.msk.f32.gmra.mxu1 %vm287_vm0, %v134_v12  ;;  %v274_v12 = vld [vmem:[%s5887_s1 + $0x3c0] sm:$0xff] }
 0x1d7   :  { %v2614_v18 = vmax.f32 %v2489_v15, 0.0  ;;  %v2120_v19 = vadd.f32 %v2119_v17, %v1054_v16  ;;  %3691 = vmatprep.mubr.msk.f32.mxu0 %vm4145_vm1, %v4144_v2  ;;  %4082 = vmatprep.mubr.msk.f32.mxu1 %vm4145_vm1, %v4144_v2 }
 0x1d8   :  { %v3546_v22 = vpop.f32.mrf.mxu0  ;;  %v3937_v23 = vpop.f32.mrf.mxu1 }
 0x1d9   :  { %2739 = vst [vmem:[#allocation2 + $0x200] sm:$0xff] %v2614_v18  ;;  %v2490_v24 = vadd.f32 %v5317_v10, %v2120_v19  ;;  %v142_v22 = vld [vmem:[%s5886_s0 + $0x3c8] sm:$0xff] }
 0x1da   :  { %v1059_v25 = vpop.f32.mrf.mxu0  ;;  %3692 = vmatmul.mubr.msk.f32.gmra.mxu0 %vm287_vm0, %v268_v20  ;;  %v2124_v26 = vpop.f32.mrf.mxu1  ;;  %4083 = vmatmul.mubr.msk.f32.gmra.mxu1 %vm287_vm0, %v135_v21  ;;  %v275_v21 = vld [vmem:[%s5887_s1 + $0x3c8] sm:$0xff] }
 0x1db   :  { %v2615_v27 = vmax.f32 %v2490_v24, 0.0  ;;  %v2125_v28 = vadd.f32 %v2124_v26, %v1059_v25  ;;  %3694 = vmatprep.mubr.msk.f32.mxu0 %vm4145_vm1, %v4144_v2  ;;  %4085 = vmatprep.mubr.msk.f32.mxu1 %vm4145_vm1, %v4144_v2 }
 0x1dc   :  { %v3549_v31 = vpop.f32.mrf.mxu0  ;;  %v3940_v32 = vpop.f32.mrf.mxu1 }
 0x1dd   :  { %2740 = vst [vmem:[#allocation2 + $0x208] sm:$0xff] %v2615_v27  ;;  %v2491_v33 = vadd.f32 %v5317_v10, %v2125_v28 }
 0x1de   :  { %v1064_v34 = vpop.f32.mrf.mxu0  ;;  %3695 = vmatmul.mubr.msk.f32.gmra.mxu0 %vm287_vm0, %v269_v29  ;;  %v2129_v35 = vpop.f32.mrf.mxu1  ;;  %4086 = vmatmul.mubr.msk.f32.gmra.mxu1 %vm287_vm0, %v136_v30  ;;  %v276_v30 = vld [vmem:[%s5887_s1 + $0x3d0] sm:$0xff] }
 0x1df   :  { %v2616_v36 = vmax.f32 %v2491_v33, 0.0  ;;  %v2130_v37 = vadd.f32 %v2129_v35, %v1064_v34  ;;  %3697 = vmatprep.mubr.msk.f32.mxu0 %vm4145_vm1, %v4144_v2  ;;  %4088 = vmatprep.mubr.msk.f32.mxu1 %vm4145_vm1, %v4144_v2  ;;  %v5803_v33 = vld [vmem:[%s5890_s4] ss:$0 sm:$0xff] }
 0x1e0   :  { %v3552_v40 = vpop.f32.mrf.mxu0  ;;  %v3943_v41 = vpop.f32.mrf.mxu1 }
 0x1e1   :  { %2741 = vst [vmem:[#allocation2 + $0x210] sm:$0xff] %v2616_v36  ;;  %v2492_v42 = vadd.f32 %v5317_v10, %v2130_v37  ;;  %v144_v40 = vld [vmem:[%s5886_s0 + $0x3d8] sm:$0xff] }
 0x1e2   :  { %v1069_v43 = vpop.f32.mrf.mxu0  ;;  %3698 = vmatmul.mubr.msk.f32.gmra.mxu0 %vm287_vm0, %v270_v38  ;;  %v2134_v44 = vpop.f32.mrf.mxu1  ;;  %4089 = vmatmul.mubr.msk.f32.gmra.mxu1 %vm287_vm0, %v137_v39  ;;  %v277_v39 = vld [vmem:[%s5887_s1 + $0x3d8] sm:$0xff] }
 0x1e3   :  { %v2617_v45 = vmax.f32 %v2492_v42, 0.0  ;;  %v2135_v46 = vadd.f32 %v2134_v44, %v1069_v43  ;;  %3700 = vmatprep.mubr.msk.f32.mxu0 %vm4145_vm1, %v4144_v2  ;;  %4091 = vmatprep.mubr.msk.f32.mxu1 %vm4145_vm1, %v4144_v2 }
 0x1e4   :  { %v3555_v49 = vpop.f32.mrf.mxu0  ;;  %v3946_v50 = vpop.f32.mrf.mxu1 }
 0x1e5   :  { %2742 = vst [vmem:[#allocation2 + $0x218] sm:$0xff] %v2617_v45  ;;  %v2493_v51 = vadd.f32 %v5317_v10, %v2135_v46  ;;  %v145_v49 = vld [vmem:[%s5886_s0 + $0x3e0] sm:$0xff] }
 0x1e6   :  { %v1074_v52 = vpop.f32.mrf.mxu0  ;;  %3701 = vmatmul.mubr.msk.f32.gmra.mxu0 %vm287_vm0, %v271_v47  ;;  %v2139_v53 = vpop.f32.mrf.mxu1  ;;  %4092 = vmatmul.mubr.msk.f32.gmra.mxu1 %vm287_vm0, %v138_v48  ;;  %v278_v48 = vld [vmem:[%s5887_s1 + $0x3e0] sm:$0xff] }
 0x1e7   :  { %v2618_v55 = vmax.f32 %v2493_v51, 0.0  ;;  %v2140_v56 = vadd.f32 %v2139_v53, %v1074_v52  ;;  %3703 = vmatprep.mubr.msk.f32.mxu0 %vm4145_vm1, %v4144_v2  ;;  %4094 = vmatprep.mubr.msk.f32.mxu1 %vm4145_vm1, %v4144_v2 }
 0x1e8   :  { %v3558_v59 = vpop.f32.mrf.mxu0  ;;  %v3949_v60 = vpop.f32.mrf.mxu1 }
 0x1e9   :  { %2743 = vst [vmem:[#allocation2 + $0x220] sm:$0xff] %v2618_v55  ;;  %v2494_v61 = vadd.f32 %v5317_v10, %v2140_v56 }
 0x1ea   :  { %v1079_v62 = vpop.f32.mrf.mxu0  ;;  %3704 = vmatmul.mubr.msk.f32.gmra.mxu0 %vm287_vm0, %v272_v57  ;;  %v2144_v63 = vpop.f32.mrf.mxu1  ;;  %4095 = vmatmul.mubr.msk.f32.gmra.mxu1 %vm287_vm0, %v139_v58 }
 0x1eb   :  { %v2619_v0 = vmax.f32 %v2494_v61, 0.0  ;;  %v2145_v1 = vadd.f32 %v2144_v63, %v1079_v62  ;;  %3706 = vmatprep.mubr.msk.f32.mxu0 %vm4145_vm1, %v4144_v2  ;;  %4097 = vmatprep.mubr.msk.f32.mxu1 %vm4145_vm1, %v4144_v2 }
 0x1ec   :  { %v3561_v5 = vpop.f32.mrf.mxu0  ;;  %v3952_v6 = vpop.f32.mrf.mxu1 }
 0x1ed   :  { %2744 = vst [vmem:[#allocation2 + $0x228] sm:$0xff] %v2619_v0  ;;  %v2495_v7 = vadd.f32 %v5317_v10, %v2145_v1 }
 0x1ee   :  { %v1084_v54 = vpop.f32.mrf.mxu0  ;;  %3707 = vmatmul.mubr.msk.f32.gmra.mxu0 %vm287_vm0, %v273_v3  ;;  %v2149_v8 = vpop.f32.mrf.mxu1  ;;  %4098 = vmatmul.mubr.msk.f32.gmra.mxu1 %vm287_vm0, %v140_v4 }
 0x1ef   :  { %v2620_v9 = vmax.f32 %v2495_v7, 0.0  ;;  %v2150_v11 = vadd.f32 %v2149_v8, %v1084_v54  ;;  %3709 = vmatprep.mubr.msk.f32.mxu0 %vm4145_vm1, %v4144_v2  ;;  %4100 = vmatprep.mubr.msk.f32.mxu1 %vm4145_vm1, %v4144_v2 }
 0x1f0   :  { %v3564_v14 = vpop.f32.mrf.mxu0  ;;  %v3955_v15 = vpop.f32.mrf.mxu1 }
 0x1f1   :  { %2745 = vst [vmem:[#allocation2 + $0x230] sm:$0xff] %v2620_v9  ;;  %v2496_v16 = vadd.f32 %v5317_v10, %v2150_v11 }
 0x1f2   :  { %v1089_v17 = vpop.f32.mrf.mxu0  ;;  %3710 = vmatmul.mubr.msk.f32.gmra.mxu0 %vm287_vm0, %v274_v12  ;;  %v2154_v18 = vpop.f32.mrf.mxu1  ;;  %4101 = vmatmul.mubr.msk.f32.gmra.mxu1 %vm287_vm0, %v141_v13 }
 0x1f3   :  { %v2621_v19 = vmax.f32 %v2496_v16, 0.0  ;;  %v2155_v20 = vadd.f32 %v2154_v18, %v1089_v17  ;;  %3712 = vmatprep.mubr.msk.f32.mxu0 %vm4145_vm1, %v4144_v2  ;;  %4103 = vmatprep.mubr.msk.f32.mxu1 %vm4145_vm1, %v4144_v2 }
 0x1f4   :  { %v3567_v23 = vpop.f32.mrf.mxu0  ;;  %v3958_v24 = vpop.f32.mrf.mxu1 }
 0x1f5   :  { %2746 = vst [vmem:[#allocation2 + $0x238] sm:$0xff] %v2621_v19  ;;  %v2497_v25 = vadd.f32 %v5317_v10, %v2155_v20  ;;  %v143_v10 = vld [vmem:[%s5886_s0 + $0x3d0] sm:$0xff]  ;;  %s4146_s0 = smov [#allocation2]  }
 0x1f6   :  { %v1094_v26 = vpop.f32.mrf.mxu0  ;;  %3713 = vmatmul.mubr.msk.f32.gmra.mxu0 %vm287_vm0, %v275_v21  ;;  %v2159_v27 = vpop.f32.mrf.mxu1  ;;  %4104 = vmatmul.mubr.msk.f32.gmra.mxu1 %vm287_vm0, %v142_v22  ;;  %s2805_s1 = sshll.u32 %s4146_s0, 4  ;;  %s2806_s1 = int_to_ptr.vmem [resolvable:$true] %s2805_s1 }
 0x1f7   :  { %v2622_v28 = vmax.f32 %v2497_v25, 0.0  ;;  %v2160_v29 = vadd.f32 %v2159_v27, %v1094_v26  ;;  %3715 = vmatprep.mubr.msk.f32.mxu0 %vm4145_vm1, %v4144_v2  ;;  %4106 = vmatprep.mubr.msk.f32.mxu1 %vm4145_vm1, %v4144_v2  ;;  %s4122_s17 = scalar_lea.vmem %s2806_s1, 16000  ;;  %p4127_p1 = scmp.lt.s32.totalorder %s2806_s1, %s2806_s1 }
 0x1f8   :  { %v3570_v31 = vpop.f32.mrf.mxu0  ;;  %v3961_v32 = vpop.f32.mrf.mxu1  ;;  %p4123_p0 = scmp.ne.s32.totalorder %s2806_s1, %s4122_s17  ;;  %p4128_p2 = scmp.lt.s32.totalorder %s4122_s17, %s4122_s17 }
 0x1f9   :  { %2747 = vst [vmem:[#allocation2 + $0x240] sm:$0xff] %v2622_v28  ;;  %v2498_v34 = vadd.f32 %v5803_v33, %v2160_v29 }
 0x1fa   :  { %v1099_v35 = vpop.f32.mrf.mxu0  ;;  %3716 = vmatmul.mubr.msk.f32.gmra.mxu0 %vm287_vm0, %v276_v30  ;;  %v2164_v36 = vpop.f32.mrf.mxu1  ;;  %4107 = vmatmul.mubr.msk.f32.gmra.mxu1 %vm287_vm0, %v143_v10  ;;  %p4129_p3 = por %p4128_p2, %p4127_p1 }
 0x1fb   :  { %v2623_v37 = vmax.f32 %v2498_v34, 0.0  ;;  %v2165_v38 = vadd.f32 %v2164_v36, %v1099_v35  ;;  %3718 = vmatprep.mubr.msk.f32.mxu0 %vm4145_vm1, %v4144_v2  ;;  %4109 = vmatprep.mubr.msk.f32.mxu1 %vm4145_vm1, %v4144_v2 }
 0x1fc   :  { %v3573_v41 = vpop.f32.mrf.mxu0  ;;  %v3964_v42 = vpop.f32.mrf.mxu1  ;;  %p4130_p4 = pnand %p4129_p3, %p4123_p0 }
 0x1fd   :  { %2748 = vst [vmem:[#allocation2 + $0x248] sm:$0xff] %v2623_v37  ;;  %v2499_v43 = vadd.f32 %v5803_v33, %v2165_v38 }
 0x1fe   :  { %v1104_v44 = vpop.f32.mrf.mxu0  ;;  %3719 = vmatmul.mubr.msk.f32.gmra.mxu0 %vm287_vm0, %v277_v39  ;;  %v2169_v45 = vpop.f32.mrf.mxu1  ;;  %4110 = vmatmul.mubr.msk.f32.gmra.mxu1 %vm287_vm0, %v144_v40 }
 0x1ff   :  { %v2624_v46 = vmax.f32 %v2499_v43, 0.0  ;;  %v2170_v47 = vadd.f32 %v2169_v45, %v1104_v44  ;;  %3721 = vmatprep.mubr.msk.f32.mxu0 %vm4145_vm1, %v4144_v2  ;;  %4112 = vmatprep.mubr.msk.f32.mxu1 %vm4145_vm1, %v4144_v2 }
 0x200   :  { %v3576_v50 = vpop.f32.mrf.mxu0  ;;  %v3967_v51 = vpop.f32.mrf.mxu1 }
 0x201   :  { %2749 = vst [vmem:[#allocation2 + $0x250] sm:$0xff] %v2624_v46  ;;  %v2500_v52 = vadd.f32 %v5803_v33, %v2170_v47 }
 0x202   :  { %v1109_v53 = vpop.f32.mrf.mxu0  ;;  %3722 = vmatmul.mubr.msk.f32.gmra.mxu0 %vm287_vm0, %v278_v48  ;;  %v2174_v55 = vpop.f32.mrf.mxu1  ;;  %4113 = vmatmul.mubr.msk.f32.gmra.mxu1 %vm287_vm0, %v145_v49 }
 0x203   :  { %v2625_v2 = vmax.f32 %v2500_v52, 0.0  ;;  %v2175_v56 = vadd.f32 %v2174_v55, %v1109_v53 }
 0x204   :  { %v3579_v57 = vpop.f32.mrf.mxu0  ;;  %v3970_v58 = vpop.f32.mrf.mxu1 }
 0x205   :  { %2750 = vst [vmem:[#allocation2 + $0x258] sm:$0xff] %v2625_v2  ;;  %v2501_v59 = vadd.f32 %v5803_v33, %v2175_v56 }
 0x206   :  { %v1114_v60 = vpop.f32.mrf.mxu0  ;;  %v2179_v61 = vpop.f32.mrf.mxu1 }
 0x207   :  { %v2626_v62 = vmax.f32 %v2501_v59, 0.0  ;;  %v2180_v63 = vadd.f32 %v2179_v61, %v1114_v60 }
 0x208   :  { %v3582_v0 = vpop.f32.mrf.mxu0  ;;  %v3973_v1 = vpop.f32.mrf.mxu1 }
 0x209   :  { %2751 = vst [vmem:[#allocation2 + $0x260] sm:$0xff] %v2626_v62  ;;  %v2502_v3 = vadd.f32 %v5803_v33, %v2180_v63 }
 0x20a   :  { %v1119_v4 = vpop.f32.mrf.mxu0  ;;  %v2184_v5 = vpop.f32.mrf.mxu1 }
 0x20b   :  { %v2627_v6 = vmax.f32 %v2502_v3, 0.0  ;;  %v2185_v7 = vadd.f32 %v2184_v5, %v1119_v4 }
 0x20c   :  { %v3585_v54 = vpop.f32.mrf.mxu0  ;;  %v3976_v8 = vpop.f32.mrf.mxu1 }
 0x20d   :  { %2752 = vst [vmem:[#allocation2 + $0x268] sm:$0xff] %v2627_v6  ;;  %v2503_v9 = vadd.f32 %v5803_v33, %v2185_v7 }
 0x20e   :  { %v1124_v11 = vpop.f32.mrf.mxu0  ;;  %v2189_v12 = vpop.f32.mrf.mxu1 }
 0x20f   :  { %v2628_v13 = vmax.f32 %v2503_v9, 0.0  ;;  %v2190_v14 = vadd.f32 %v2189_v12, %v1124_v11 }
 0x210   :  { %v3588_v15 = vpop.f32.mrf.mxu0  ;;  %v3979_v16 = vpop.f32.mrf.mxu1 }
 0x211   :  { %2753 = vst [vmem:[#allocation2 + $0x270] sm:$0xff] %v2628_v13  ;;  %v2504_v17 = vadd.f32 %v5803_v33, %v2190_v14 }
 0x212   :  { %v1129_v18 = vpop.f32.mrf.mxu0  ;;  %v2194_v19 = vpop.f32.mrf.mxu1 }
 0x213   :  { %v2629_v20 = vmax.f32 %v2504_v17, 0.0  ;;  %v2195_v21 = vadd.f32 %v2194_v19, %v1129_v18 }
 0x214   :  { %v3591_v22 = vpop.f32.mrf.mxu0  ;;  %v3982_v23 = vpop.f32.mrf.mxu1 }
 0x215   :  { %2754 = vst [vmem:[#allocation2 + $0x278] sm:$0xff] %v2629_v20  ;;  %v2505_v24 = vadd.f32 %v5803_v33, %v2195_v21 }
 0x216   :  { %v1134_v25 = vpop.f32.mrf.mxu0  ;;  %v2199_v26 = vpop.f32.mrf.mxu1 }
 0x217   :  { %v2630_v27 = vmax.f32 %v2505_v24, 0.0  ;;  %v2200_v28 = vadd.f32 %v2199_v26, %v1134_v25 }
 0x218   :  { %v3594_v29 = vpop.f32.mrf.mxu0  ;;  %v3985_v30 = vpop.f32.mrf.mxu1 }
 0x219   :  { %2755 = vst [vmem:[#allocation2 + $0x280] sm:$0xff] %v2630_v27  ;;  %v2506_v10 = vadd.f32 %v5803_v33, %v2200_v28 }
 0x21a   :  { %v1139_v31 = vpop.f32.mrf.mxu0  ;;  %v2204_v32 = vpop.f32.mrf.mxu1 }
 0x21b   :  { %v2631_v34 = vmax.f32 %v2506_v10, 0.0  ;;  %v2205_v35 = vadd.f32 %v2204_v32, %v1139_v31 }
 0x21c   :  { %v3597_v36 = vpop.f32.mrf.mxu0  ;;  %v3988_v37 = vpop.f32.mrf.mxu1 }
 0x21d   :  { %2756 = vst [vmem:[#allocation2 + $0x288] sm:$0xff] %v2631_v34  ;;  %v2507_v38 = vadd.f32 %v5803_v33, %v2205_v35 }
 0x21e   :  { %v1144_v39 = vpop.f32.mrf.mxu0  ;;  %v2209_v40 = vpop.f32.mrf.mxu1 }
 0x21f   :  { %v2632_v41 = vmax.f32 %v2507_v38, 0.0  ;;  %v2210_v42 = vadd.f32 %v2209_v40, %v1144_v39 }
 0x220   :  { %v3600_v43 = vpop.f32.mrf.mxu0  ;;  %v3991_v44 = vpop.f32.mrf.mxu1 }
 0x221   :  { %2757 = vst [vmem:[#allocation2 + $0x290] sm:$0xff] %v2632_v41  ;;  %v2508_v45 = vadd.f32 %v5803_v33, %v2210_v42 }
 0x222   :  { %v1149_v46 = vpop.f32.mrf.mxu0  ;;  %v2214_v47 = vpop.f32.mrf.mxu1 }
 0x223   :  { %v2633_v48 = vmax.f32 %v2508_v45, 0.0  ;;  %v2215_v49 = vadd.f32 %v2214_v47, %v1149_v46 }
 0x224   :  { %v3603_v50 = vpop.f32.mrf.mxu0  ;;  %v3994_v51 = vpop.f32.mrf.mxu1 }
 0x225   :  { %2758 = vst [vmem:[#allocation2 + $0x298] sm:$0xff] %v2633_v48  ;;  %v2509_v52 = vadd.f32 %v5803_v33, %v2215_v49 }
 0x226   :  { %v1154_v53 = vpop.f32.mrf.mxu0  ;;  %v2219_v55 = vpop.f32.mrf.mxu1 }
 0x227   :  { %v2634_v2 = vmax.f32 %v2509_v52, 0.0  ;;  %v2220_v56 = vadd.f32 %v2219_v55, %v1154_v53 }
 0x228   :  { %v3606_v57 = vpop.f32.mrf.mxu0  ;;  %v3997_v58 = vpop.f32.mrf.mxu1 }
 0x229   :  { %2759 = vst [vmem:[#allocation2 + $0x2a0] sm:$0xff] %v2634_v2  ;;  %v2510_v59 = vadd.f32 %v5803_v33, %v2220_v56 }
 0x22a   :  { %v1159_v60 = vpop.f32.mrf.mxu0  ;;  %v2224_v61 = vpop.f32.mrf.mxu1 }
 0x22b   :  { %v2635_v62 = vmax.f32 %v2510_v59, 0.0  ;;  %v2225_v63 = vadd.f32 %v2224_v61, %v1159_v60 }
 0x22c   :  { %v3609_v0 = vpop.f32.mrf.mxu0  ;;  %v4000_v1 = vpop.f32.mrf.mxu1 }
 0x22d   :  { %2760 = vst [vmem:[#allocation2 + $0x2a8] sm:$0xff] %v2635_v62  ;;  %v2511_v3 = vadd.f32 %v5803_v33, %v2225_v63 }
 0x22e   :  { %v1164_v4 = vpop.f32.mrf.mxu0  ;;  %v2229_v5 = vpop.f32.mrf.mxu1 }
 0x22f   :  { %v2636_v6 = vmax.f32 %v2511_v3, 0.0  ;;  %v2230_v7 = vadd.f32 %v2229_v5, %v1164_v4 }
 0x230   :  { %v3612_v54 = vpop.f32.mrf.mxu0  ;;  %v4003_v8 = vpop.f32.mrf.mxu1 }
 0x231   :  { %2761 = vst [vmem:[#allocation2 + $0x2b0] sm:$0xff] %v2636_v6  ;;  %v2512_v9 = vadd.f32 %v5803_v33, %v2230_v7 }
 0x232   :  { %v1169_v11 = vpop.f32.mrf.mxu0  ;;  %v2234_v12 = vpop.f32.mrf.mxu1 }
 0x233   :  { %v2637_v13 = vmax.f32 %v2512_v9, 0.0  ;;  %v2235_v14 = vadd.f32 %v2234_v12, %v1169_v11 }
 0x234   :  { %v3615_v15 = vpop.f32.mrf.mxu0  ;;  %v4006_v16 = vpop.f32.mrf.mxu1 }
 0x235   :  { %2762 = vst [vmem:[#allocation2 + $0x2b8] sm:$0xff] %v2637_v13  ;;  %v2513_v17 = vadd.f32 %v5803_v33, %v2235_v14 }
 0x236   :  { %v1174_v18 = vpop.f32.mrf.mxu0  ;;  %v2239_v19 = vpop.f32.mrf.mxu1 }
 0x237   :  { %v2638_v20 = vmax.f32 %v2513_v17, 0.0  ;;  %v2240_v21 = vadd.f32 %v2239_v19, %v1174_v18 }
 0x238   :  { %v3618_v22 = vpop.f32.mrf.mxu0  ;;  %v4009_v23 = vpop.f32.mrf.mxu1 }
 0x239   :  { %2763 = vst [vmem:[#allocation2 + $0x2c0] sm:$0xff] %v2638_v20  ;;  %v2514_v24 = vadd.f32 %v5803_v33, %v2240_v21 }
 0x23a   :  { %v1179_v25 = vpop.f32.mrf.mxu0  ;;  %v2244_v26 = vpop.f32.mrf.mxu1 }
 0x23b   :  { %v2639_v27 = vmax.f32 %v2514_v24, 0.0  ;;  %v2245_v28 = vadd.f32 %v2244_v26, %v1179_v25 }
 0x23c   :  { %v3621_v29 = vpop.f32.mrf.mxu0  ;;  %v4012_v30 = vpop.f32.mrf.mxu1 }
 0x23d   :  { %2764 = vst [vmem:[#allocation2 + $0x2c8] sm:$0xff] %v2639_v27  ;;  %v2515_v10 = vadd.f32 %v5803_v33, %v2245_v28 }
 0x23e   :  { %v1184_v31 = vpop.f32.mrf.mxu0  ;;  %v2249_v32 = vpop.f32.mrf.mxu1 }
 0x23f   :  { %v2640_v34 = vmax.f32 %v2515_v10, 0.0  ;;  %v2250_v35 = vadd.f32 %v2249_v32, %v1184_v31 }
 0x240   :  { %v3624_v36 = vpop.f32.mrf.mxu0  ;;  %v4015_v37 = vpop.f32.mrf.mxu1 }
 0x241   :  { %2765 = vst [vmem:[#allocation2 + $0x2d0] sm:$0xff] %v2640_v34  ;;  %v2516_v38 = vadd.f32 %v5803_v33, %v2250_v35 }
 0x242   :  { %v1189_v39 = vpop.f32.mrf.mxu0  ;;  %v2254_v40 = vpop.f32.mrf.mxu1 }
 0x243   :  { %v2641_v41 = vmax.f32 %v2516_v38, 0.0  ;;  %v2255_v42 = vadd.f32 %v2254_v40, %v1189_v39 }
 0x244   :  { %v3627_v43 = vpop.f32.mrf.mxu0  ;;  %v4018_v44 = vpop.f32.mrf.mxu1 }
 0x245   :  { %2766 = vst [vmem:[#allocation2 + $0x2d8] sm:$0xff] %v2641_v41  ;;  %v2517_v45 = vadd.f32 %v5803_v33, %v2255_v42 }
 0x246   :  { %v1194_v46 = vpop.f32.mrf.mxu0  ;;  %v2259_v47 = vpop.f32.mrf.mxu1 }
 0x247   :  { %v2642_v48 = vmax.f32 %v2517_v45, 0.0  ;;  %v2260_v49 = vadd.f32 %v2259_v47, %v1194_v46 }
 0x248   :  { %v3630_v50 = vpop.f32.mrf.mxu0  ;;  %v4021_v51 = vpop.f32.mrf.mxu1 }
 0x249   :  { %2767 = vst [vmem:[#allocation2 + $0x2e0] sm:$0xff] %v2642_v48  ;;  %v2518_v52 = vadd.f32 %v5803_v33, %v2260_v49 }
 0x24a   :  { %v1199_v53 = vpop.f32.mrf.mxu0  ;;  %v2264_v55 = vpop.f32.mrf.mxu1 }
 0x24b   :  { %v2643_v2 = vmax.f32 %v2518_v52, 0.0  ;;  %v2265_v56 = vadd.f32 %v2264_v55, %v1199_v53 }
 0x24c   :  { %v3633_v57 = vpop.f32.mrf.mxu0  ;;  %v4024_v58 = vpop.f32.mrf.mxu1 }
 0x24d   :  { %2768 = vst [vmem:[#allocation2 + $0x2e8] sm:$0xff] %v2643_v2  ;;  %v2519_v59 = vadd.f32 %v5803_v33, %v2265_v56 }
 0x24e   :  { %v1204_v60 = vpop.f32.mrf.mxu0  ;;  %v2269_v61 = vpop.f32.mrf.mxu1 }
 0x24f   :  { %v2644_v62 = vmax.f32 %v2519_v59, 0.0  ;;  %v2270_v63 = vadd.f32 %v2269_v61, %v1204_v60 }
 0x250   :  { %v3636_v0 = vpop.f32.mrf.mxu0  ;;  %v4027_v1 = vpop.f32.mrf.mxu1 }
 0x251   :  { %2769 = vst [vmem:[#allocation2 + $0x2f0] sm:$0xff] %v2644_v62  ;;  %v2520_v3 = vadd.f32 %v5803_v33, %v2270_v63 }
 0x252   :  { %v1209_v4 = vpop.f32.mrf.mxu0  ;;  %v2274_v5 = vpop.f32.mrf.mxu1 }
 0x253   :  { %v2645_v6 = vmax.f32 %v2520_v3, 0.0  ;;  %v2275_v7 = vadd.f32 %v2274_v5, %v1209_v4 }
 0x254   :  { %v3639_v54 = vpop.f32.mrf.mxu0  ;;  %v4030_v8 = vpop.f32.mrf.mxu1 }
 0x255   :  { %2770 = vst [vmem:[#allocation2 + $0x2f8] sm:$0xff] %v2645_v6  ;;  %v2521_v9 = vadd.f32 %v5803_v33, %v2275_v7 }
 0x256   :  { %v1214_v11 = vpop.f32.mrf.mxu0  ;;  %v2279_v12 = vpop.f32.mrf.mxu1 }
 0x257   :  { %v2646_v13 = vmax.f32 %v2521_v9, 0.0  ;;  %v2280_v14 = vadd.f32 %v2279_v12, %v1214_v11 }
 0x258   :  { %v3642_v15 = vpop.f32.mrf.mxu0  ;;  %v4033_v16 = vpop.f32.mrf.mxu1 }
 0x259   :  { %2771 = vst [vmem:[#allocation2 + $0x300] sm:$0xff] %v2646_v13  ;;  %v2522_v17 = vadd.f32 %v5803_v33, %v2280_v14 }
 0x25a   :  { %v1219_v18 = vpop.f32.mrf.mxu0  ;;  %v2284_v19 = vpop.f32.mrf.mxu1 }
 0x25b   :  { %v2647_v20 = vmax.f32 %v2522_v17, 0.0  ;;  %v2285_v21 = vadd.f32 %v2284_v19, %v1219_v18 }
 0x25c   :  { %v3645_v22 = vpop.f32.mrf.mxu0  ;;  %v4036_v23 = vpop.f32.mrf.mxu1 }
 0x25d   :  { %2772 = vst [vmem:[#allocation2 + $0x308] sm:$0xff] %v2647_v20  ;;  %v2523_v24 = vadd.f32 %v5803_v33, %v2285_v21 }
 0x25e   :  { %v1224_v25 = vpop.f32.mrf.mxu0  ;;  %v2289_v26 = vpop.f32.mrf.mxu1 }
 0x25f   :  { %v2648_v27 = vmax.f32 %v2523_v24, 0.0  ;;  %v2290_v28 = vadd.f32 %v2289_v26, %v1224_v25 }
 0x260   :  { %v3648_v29 = vpop.f32.mrf.mxu0  ;;  %v4039_v30 = vpop.f32.mrf.mxu1 }
 0x261   :  { %2773 = vst [vmem:[#allocation2 + $0x310] sm:$0xff] %v2648_v27  ;;  %v2524_v10 = vadd.f32 %v5803_v33, %v2290_v28 }
 0x262   :  { %v1229_v31 = vpop.f32.mrf.mxu0  ;;  %v2294_v32 = vpop.f32.mrf.mxu1 }
 0x263   :  { %v2649_v34 = vmax.f32 %v2524_v10, 0.0  ;;  %v2295_v35 = vadd.f32 %v2294_v32, %v1229_v31 }
 0x264   :  { %v3651_v36 = vpop.f32.mrf.mxu0  ;;  %v4042_v37 = vpop.f32.mrf.mxu1 }
 0x265   :  { %2774 = vst [vmem:[#allocation2 + $0x318] sm:$0xff] %v2649_v34  ;;  %v2525_v38 = vadd.f32 %v5803_v33, %v2295_v35 }
 0x266   :  { %v1234_v39 = vpop.f32.mrf.mxu0  ;;  %v2299_v40 = vpop.f32.mrf.mxu1 }
 0x267   :  { %v2650_v41 = vmax.f32 %v2525_v38, 0.0  ;;  %v2300_v42 = vadd.f32 %v2299_v40, %v1234_v39 }
 0x268   :  { %v3654_v43 = vpop.f32.mrf.mxu0  ;;  %v4045_v44 = vpop.f32.mrf.mxu1 }
 0x269   :  { %2775 = vst [vmem:[#allocation2 + $0x320] sm:$0xff] %v2650_v41  ;;  %v2526_v45 = vadd.f32 %v5803_v33, %v2300_v42 }
 0x26a   :  { %v1239_v46 = vpop.f32.mrf.mxu0  ;;  %v2304_v47 = vpop.f32.mrf.mxu1 }
 0x26b   :  { %v2651_v48 = vmax.f32 %v2526_v45, 0.0  ;;  %v2305_v49 = vadd.f32 %v2304_v47, %v1239_v46 }
 0x26c   :  { %v3657_v50 = vpop.f32.mrf.mxu0  ;;  %v4048_v51 = vpop.f32.mrf.mxu1 }
 0x26d   :  { %2776 = vst [vmem:[#allocation2 + $0x328] sm:$0xff] %v2651_v48  ;;  %v2527_v52 = vadd.f32 %v5803_v33, %v2305_v49 }
 0x26e   :  { %v1244_v53 = vpop.f32.mrf.mxu0  ;;  %v2309_v55 = vpop.f32.mrf.mxu1 }
 0x26f   :  { %v2652_v2 = vmax.f32 %v2527_v52, 0.0  ;;  %v2310_v56 = vadd.f32 %v2309_v55, %v1244_v53 }
 0x270   :  { %v3660_v57 = vpop.f32.mrf.mxu0  ;;  %v4051_v58 = vpop.f32.mrf.mxu1 }
 0x271   :  { %2777 = vst [vmem:[#allocation2 + $0x330] sm:$0xff] %v2652_v2  ;;  %v2528_v59 = vadd.f32 %v5803_v33, %v2310_v56 }
 0x272   :  { %v1249_v60 = vpop.f32.mrf.mxu0  ;;  %v2314_v61 = vpop.f32.mrf.mxu1 }
 0x273   :  { %v2653_v62 = vmax.f32 %v2528_v59, 0.0  ;;  %v2315_v63 = vadd.f32 %v2314_v61, %v1249_v60 }
 0x274   :  { %v3663_v0 = vpop.f32.mrf.mxu0  ;;  %v4054_v1 = vpop.f32.mrf.mxu1 }
 0x275   :  { %2778 = vst [vmem:[#allocation2 + $0x338] sm:$0xff] %v2653_v62  ;;  %v2529_v3 = vadd.f32 %v5803_v33, %v2315_v63 }
 0x276   :  { %v1254_v4 = vpop.f32.mrf.mxu0  ;;  %v2319_v5 = vpop.f32.mrf.mxu1 }
 0x277   :  { %v2654_v6 = vmax.f32 %v2529_v3, 0.0  ;;  %v2320_v7 = vadd.f32 %v2319_v5, %v1254_v4 }
 0x278   :  { %v3666_v54 = vpop.f32.mrf.mxu0  ;;  %v4057_v8 = vpop.f32.mrf.mxu1 }
 0x279   :  { %2779 = vst [vmem:[#allocation2 + $0x340] sm:$0xff] %v2654_v6  ;;  %v2530_v9 = vadd.f32 %v5803_v33, %v2320_v7 }
 0x27a   :  { %v1259_v11 = vpop.f32.mrf.mxu0  ;;  %v2324_v12 = vpop.f32.mrf.mxu1 }
 0x27b   :  { %v2655_v13 = vmax.f32 %v2530_v9, 0.0  ;;  %v2325_v14 = vadd.f32 %v2324_v12, %v1259_v11 }
 0x27c   :  { %v3669_v15 = vpop.f32.mrf.mxu0  ;;  %v4060_v16 = vpop.f32.mrf.mxu1 }
 0x27d   :  { %2780 = vst [vmem:[#allocation2 + $0x348] sm:$0xff] %v2655_v13  ;;  %v2531_v17 = vadd.f32 %v5803_v33, %v2325_v14 }
 0x27e   :  { %v1264_v18 = vpop.f32.mrf.mxu0  ;;  %v2329_v19 = vpop.f32.mrf.mxu1 }
 0x27f   :  { %v2656_v20 = vmax.f32 %v2531_v17, 0.0  ;;  %v2330_v21 = vadd.f32 %v2329_v19, %v1264_v18 }
 0x280   :  { %v3672_v22 = vpop.f32.mrf.mxu0  ;;  %v4063_v23 = vpop.f32.mrf.mxu1 }
 0x281   :  { %2781 = vst [vmem:[#allocation2 + $0x350] sm:$0xff] %v2656_v20  ;;  %v2532_v24 = vadd.f32 %v5803_v33, %v2330_v21 }
 0x282   :  { %v1269_v25 = vpop.f32.mrf.mxu0  ;;  %v2334_v26 = vpop.f32.mrf.mxu1 }
 0x283   :  { %v2657_v27 = vmax.f32 %v2532_v24, 0.0  ;;  %v2335_v28 = vadd.f32 %v2334_v26, %v1269_v25 }
 0x284   :  { %v3675_v29 = vpop.f32.mrf.mxu0  ;;  %v4066_v30 = vpop.f32.mrf.mxu1 }
 0x285   :  { %2782 = vst [vmem:[#allocation2 + $0x358] sm:$0xff] %v2657_v27  ;;  %v2533_v10 = vadd.f32 %v5803_v33, %v2335_v28 }
 0x286   :  { %v1274_v31 = vpop.f32.mrf.mxu0  ;;  %v2339_v32 = vpop.f32.mrf.mxu1 }
 0x287   :  { %v2658_v34 = vmax.f32 %v2533_v10, 0.0  ;;  %v2340_v35 = vadd.f32 %v2339_v32, %v1274_v31 }
 0x288   :  { %v3678_v36 = vpop.f32.mrf.mxu0  ;;  %v4069_v37 = vpop.f32.mrf.mxu1 }
 0x289   :  { %2783 = vst [vmem:[#allocation2 + $0x360] sm:$0xff] %v2658_v34  ;;  %v2534_v38 = vadd.f32 %v5803_v33, %v2340_v35 }
 0x28a   :  { %v1279_v39 = vpop.f32.mrf.mxu0  ;;  %v2344_v40 = vpop.f32.mrf.mxu1 }
 0x28b   :  { %v2659_v41 = vmax.f32 %v2534_v38, 0.0  ;;  %v2345_v42 = vadd.f32 %v2344_v40, %v1279_v39 }
 0x28c   :  { %v3681_v43 = vpop.f32.mrf.mxu0  ;;  %v4072_v44 = vpop.f32.mrf.mxu1 }
 0x28d   :  { %2784 = vst [vmem:[#allocation2 + $0x368] sm:$0xff] %v2659_v41  ;;  %v2535_v45 = vadd.f32 %v5803_v33, %v2345_v42 }
 0x28e   :  { %v1284_v46 = vpop.f32.mrf.mxu0  ;;  %v2349_v47 = vpop.f32.mrf.mxu1 }
 0x28f   :  { %v2660_v48 = vmax.f32 %v2535_v45, 0.0  ;;  %v2350_v49 = vadd.f32 %v2349_v47, %v1284_v46 }
 0x290   :  { %v3684_v50 = vpop.f32.mrf.mxu0  ;;  %v4075_v51 = vpop.f32.mrf.mxu1 }
 0x291   :  { %2785 = vst [vmem:[#allocation2 + $0x370] sm:$0xff] %v2660_v48  ;;  %v2536_v52 = vadd.f32 %v5803_v33, %v2350_v49 }
 0x292   :  { %v1289_v53 = vpop.f32.mrf.mxu0  ;;  %v2354_v55 = vpop.f32.mrf.mxu1 }
 0x293   :  { %v2661_v2 = vmax.f32 %v2536_v52, 0.0  ;;  %v2355_v56 = vadd.f32 %v2354_v55, %v1289_v53 }
 0x294   :  { %v3687_v57 = vpop.f32.mrf.mxu0  ;;  %v4078_v58 = vpop.f32.mrf.mxu1 }
 0x295   :  { %2786 = vst [vmem:[#allocation2 + $0x378] sm:$0xff] %v2661_v2  ;;  %v2537_v59 = vadd.f32 %v5803_v33, %v2355_v56 }
 0x296   :  { %v1294_v60 = vpop.f32.mrf.mxu0  ;;  %v2359_v61 = vpop.f32.mrf.mxu1 }
 0x297   :  { %v2662_v62 = vmax.f32 %v2537_v59, 0.0  ;;  %v2360_v63 = vadd.f32 %v2359_v61, %v1294_v60 }
 0x298   :  { %v3690_v0 = vpop.f32.mrf.mxu0  ;;  %v4081_v1 = vpop.f32.mrf.mxu1 }
 0x299   :  { %2787 = vst [vmem:[#allocation2 + $0x380] sm:$0xff] %v2662_v62  ;;  %v2538_v3 = vadd.f32 %v5803_v33, %v2360_v63 }
 0x29a   :  { %v1299_v4 = vpop.f32.mrf.mxu0  ;;  %v2364_v5 = vpop.f32.mrf.mxu1 }
 0x29b   :  { %v2663_v6 = vmax.f32 %v2538_v3, 0.0  ;;  %v2365_v7 = vadd.f32 %v2364_v5, %v1299_v4 }
 0x29c   :  { %v3693_v54 = vpop.f32.mrf.mxu0  ;;  %v4084_v8 = vpop.f32.mrf.mxu1 }
 0x29d   :  { %2788 = vst [vmem:[#allocation2 + $0x388] sm:$0xff] %v2663_v6  ;;  %v2539_v9 = vadd.f32 %v5803_v33, %v2365_v7 }
 0x29e   :  { %v1304_v11 = vpop.f32.mrf.mxu0  ;;  %v2369_v12 = vpop.f32.mrf.mxu1 }
 0x29f   :  { %v2664_v13 = vmax.f32 %v2539_v9, 0.0  ;;  %v2370_v14 = vadd.f32 %v2369_v12, %v1304_v11 }
 0x2a0   :  { %v3696_v15 = vpop.f32.mrf.mxu0  ;;  %v4087_v16 = vpop.f32.mrf.mxu1 }
 0x2a1   :  { %2789 = vst [vmem:[#allocation2 + $0x390] sm:$0xff] %v2664_v13  ;;  %v2540_v17 = vadd.f32 %v5803_v33, %v2370_v14 }
 0x2a2   :  { %v1309_v18 = vpop.f32.mrf.mxu0  ;;  %v2374_v19 = vpop.f32.mrf.mxu1 }
 0x2a3   :  { %v2665_v20 = vmax.f32 %v2540_v17, 0.0  ;;  %v2375_v21 = vadd.f32 %v2374_v19, %v1309_v18 }
 0x2a4   :  { %v3699_v22 = vpop.f32.mrf.mxu0  ;;  %v4090_v23 = vpop.f32.mrf.mxu1 }
 0x2a5   :  { %2790 = vst [vmem:[#allocation2 + $0x398] sm:$0xff] %v2665_v20  ;;  %v2541_v24 = vadd.f32 %v5803_v33, %v2375_v21 }
 0x2a6   :  { %v1314_v25 = vpop.f32.mrf.mxu0  ;;  %v2379_v26 = vpop.f32.mrf.mxu1 }
 0x2a7   :  { %v2666_v27 = vmax.f32 %v2541_v24, 0.0  ;;  %v2380_v28 = vadd.f32 %v2379_v26, %v1314_v25 }
 0x2a8   :  { %v3702_v29 = vpop.f32.mrf.mxu0  ;;  %v4093_v30 = vpop.f32.mrf.mxu1 }
 0x2a9   :  { %2791 = vst [vmem:[#allocation2 + $0x3a0] sm:$0xff] %v2666_v27  ;;  %v2542_v10 = vadd.f32 %v5803_v33, %v2380_v28 }
 0x2aa   :  { %v1319_v31 = vpop.f32.mrf.mxu0  ;;  %v2384_v32 = vpop.f32.mrf.mxu1 }
 0x2ab   :  { %v2667_v34 = vmax.f32 %v2542_v10, 0.0  ;;  %v2385_v35 = vadd.f32 %v2384_v32, %v1319_v31 }
 0x2ac   :  { %v3705_v36 = vpop.f32.mrf.mxu0  ;;  %v4096_v37 = vpop.f32.mrf.mxu1 }
 0x2ad   :  { %2792 = vst [vmem:[#allocation2 + $0x3a8] sm:$0xff] %v2667_v34  ;;  %v2543_v38 = vadd.f32 %v5803_v33, %v2385_v35 }
 0x2ae   :  { %v1324_v39 = vpop.f32.mrf.mxu0  ;;  %v2389_v40 = vpop.f32.mrf.mxu1 }
 0x2af   :  { %v2668_v41 = vmax.f32 %v2543_v38, 0.0  ;;  %v2390_v42 = vadd.f32 %v2389_v40, %v1324_v39 }
 0x2b0   :  { %v3708_v43 = vpop.f32.mrf.mxu0  ;;  %v4099_v44 = vpop.f32.mrf.mxu1 }
 0x2b1   :  { %2793 = vst [vmem:[#allocation2 + $0x3b0] sm:$0xff] %v2668_v41  ;;  %v2544_v45 = vadd.f32 %v5803_v33, %v2390_v42 }
 0x2b2   :  { %v1329_v46 = vpop.f32.mrf.mxu0  ;;  %v2394_v47 = vpop.f32.mrf.mxu1 }
 0x2b3   :  { %v2669_v48 = vmax.f32 %v2544_v45, 0.0  ;;  %v2395_v49 = vadd.f32 %v2394_v47, %v1329_v46 }
 0x2b4   :  { %v3711_v50 = vpop.f32.mrf.mxu0  ;;  %v4102_v51 = vpop.f32.mrf.mxu1 }
 0x2b5   :  { %2794 = vst [vmem:[#allocation2 + $0x3b8] sm:$0xff] %v2669_v48  ;;  %v2545_v52 = vadd.f32 %v5803_v33, %v2395_v49 }
 0x2b6   :  { %v1334_v53 = vpop.f32.mrf.mxu0  ;;  %v2399_v55 = vpop.f32.mrf.mxu1 }
 0x2b7   :  { %v2670_v2 = vmax.f32 %v2545_v52, 0.0  ;;  %v2400_v56 = vadd.f32 %v2399_v55, %v1334_v53 }
 0x2b8   :  { %v3714_v57 = vpop.f32.mrf.mxu0  ;;  %v4105_v58 = vpop.f32.mrf.mxu1 }
 0x2b9   :  { %2795 = vst [vmem:[#allocation2 + $0x3c0] sm:$0xff] %v2670_v2  ;;  %v2546_v59 = vadd.f32 %v5803_v33, %v2400_v56 }
 0x2ba   :  { %v1339_v60 = vpop.f32.mrf.mxu0  ;;  %v2404_v61 = vpop.f32.mrf.mxu1 }
 0x2bb   :  { %v2671_v62 = vmax.f32 %v2546_v59, 0.0  ;;  %v2405_v63 = vadd.f32 %v2404_v61, %v1339_v60 }
 0x2bc   :  { %v3717_v0 = vpop.f32.mrf.mxu0  ;;  %v4108_v1 = vpop.f32.mrf.mxu1 }
 0x2bd   :  { %2796 = vst [vmem:[#allocation2 + $0x3c8] sm:$0xff] %v2671_v62  ;;  %v2547_v3 = vadd.f32 %v5803_v33, %v2405_v63 }
 0x2be   :  { %v1344_v4 = vpop.f32.mrf.mxu0  ;;  %v2409_v5 = vpop.f32.mrf.mxu1 }
 0x2bf   :  { %v2672_v6 = vmax.f32 %v2547_v3, 0.0  ;;  %v2410_v7 = vadd.f32 %v2409_v5, %v1344_v4 }
 0x2c0   :  { %v3720_v54 = vpop.f32.mrf.mxu0  ;;  %v4111_v8 = vpop.f32.mrf.mxu1 }
 0x2c1   :  { %2797 = vst [vmem:[#allocation2 + $0x3d0] sm:$0xff] %v2672_v6  ;;  %v2548_v9 = vadd.f32 %v5803_v33, %v2410_v7 }
 0x2c2   :  { %v1349_v11 = vpop.f32.mrf.mxu0  ;;  %v2414_v12 = vpop.f32.mrf.mxu1 }
 0x2c3   :  { %v2673_v13 = vmax.f32 %v2548_v9, 0.0  ;;  %v2415_v14 = vadd.f32 %v2414_v12, %v1349_v11 }
 0x2c4   :  { %v3723_v15 = vpop.f32.mrf.mxu0  ;;  %v4114_v16 = vpop.f32.mrf.mxu1 }
 0x2c5   :  { %2798 = vst [vmem:[#allocation2 + $0x3d8] sm:$0xff] %v2673_v13  ;;  %v2549_v17 = vadd.f32 %v5803_v33, %v2415_v14 }
 0x2c7   :  { %v2674_v18 = vmax.f32 %v2549_v17, 0.0 }
 0x2c9   :  { %2799 = vst [vmem:[#allocation2 + $0x3e0] sm:$0xff] %v2674_v18 }
 0x2ca   :  { %4133 = shalt.err (!%p4130_p4)
}
 0x2cb   :  { %s4147_s18 = smov 128   ;;  %s4148_s19 = smov 8  }
 0x2cc   :  { %2811 = dma.vmem_to_hbm [thread:$0]  %s2806_s1, 16000, %s5891_s5, [#allocation3], %s4147_s18, %s4147_s18, %s4148_s19  }
 0x2cd   :  { %4142 = dma.done.wait [#allocation3], 16000  }
 0x2ce   :  { %4143 = vsyncadd [#allocation3], 4294951296 }
 0x2cf   :  { %2815 = vsyncpa [#allocation3], 1 }

</bundles_post_ra>
